<compile_context>
chip_gen: v5e
topology: v5e:2x2
jax: 0.10.0
libtpu: 0.0.40
codegen_flags: <defaults>
</compile_context>

<pallas_src>
import functools

import jax
import jax.numpy as jnp
from jax.experimental import pallas as pl
from jax.experimental.pallas import tpu as pltpu

_LANE = 128
_SUBLANE = 8


def _round_up(x, m):
    return (x + m - 1) // m * m


def _vmem_capacity_bytes():
    """Physical VMEM of the local chip; conservative fallback if unavailable."""
    try:
        info = pltpu.get_tpu_info()
        cap = getattr(info, "vmem_capacity_bytes", None)
        if cap:
            return int(cap)
    except Exception:
        pass
    return 64 * 1024 * 1024   # v7x per-TC size; safe lower bound everywhere


# ----------------------------------------------------------------------------
# Kernel
# ----------------------------------------------------------------------------
def dnn_kernel(x_ref, w_in_ref, b_in_ref, w_hid_ref, b_hid_ref,
               w_out_ref, b_out_ref, o_ref, *, n_hidden_layers):
    """Fused MLP forward for one batch tile; all weights resident in VMEM.

    Weights are pre-transposed to [in_dim, out_dim] and stored bf16; the
    feature tile is cast to bf16 in-kernel (VPU slot has slack) and every
    matmul accumulates in f32 on the MXU.
    """
    x = x_ref[...].astype(jnp.bfloat16)                        # [bb, d_f] bf16

    # input layer: Linear + ReLU
    h = jnp.dot(x, w_in_ref[...], preferred_element_type=jnp.float32)
    h = jnp.maximum(h + b_in_ref[...], 0.0)                    # bias (1, d_h)

    # hidden layers: n_hidden_layers x (Linear + ReLU); static unroll
    for i in range(n_hidden_layers):
        h = jnp.dot(h.astype(jnp.bfloat16), w_hid_ref[i],
                    preferred_element_type=jnp.float32)
        h = jnp.maximum(h + b_hid_ref[i], 0.0)

    # output layer: plain Linear (apply_bbp=False), no activation
    logits = jnp.dot(h.astype(jnp.bfloat16), w_out_ref[...],
                     preferred_element_type=jnp.float32)
    o_ref[...] = (logits + b_out_ref[...]).astype(o_ref.dtype)  # bf16 store


# ----------------------------------------------------------------------------
# Wrapper
# ----------------------------------------------------------------------------
def _prepare_kernel_params(params):
    """PyTorch-layout f32 params -> kernel layout (transposed, padded, bf16).

    Hidden/output dims are zero-padded to multiples of 128 (lane-dense); the
    feature dim is left at its natural size (it is a full-array block dim).
    Padding is numerically inert: padded weights are 0, padded biases are 0,
    ReLU(0) = 0.
    """
    w_in, b_in, w_hid, b_hid, w_out, b_out = params
    d_hidden, d_feature = w_in.shape
    n_hidden = w_hid.shape[0]
    d_out = w_out.shape[0]

    d_h = _round_up(d_hidden, _LANE)
    d_o = _round_up(d_out, _LANE)

    w_in_t = jnp.pad(w_in.T, ((0, 0), (0, d_h - d_hidden))).astype(jnp.bfloat16)
    w_hid_t = jnp.pad(jnp.transpose(w_hid, (0, 2, 1)),
                      ((0, 0), (0, d_h - d_hidden), (0, d_h - d_hidden))
                      ).astype(jnp.bfloat16)
    w_out_t = jnp.pad(w_out.T, ((0, d_h - d_hidden), (0, d_o - d_out))
                      ).astype(jnp.bfloat16)

    b_in_p = jnp.pad(b_in, (0, d_h - d_hidden)).reshape(1, d_h).astype(jnp.float32)
    b_hid_p = jnp.pad(b_hid, ((0, 0), (0, d_h - d_hidden))).astype(jnp.float32)
    b_out_p = jnp.pad(b_out, (0, d_o - d_out)).reshape(1, d_o).astype(jnp.float32)

    kparams = (w_in_t, b_in_p, w_hid_t, b_hid_p, w_out_t, b_out_p)
    return kparams, (d_h, d_o, d_out, n_hidden)


def dnn_forward(features, params, *, block_b=256):
    """Tile over batch; all (pre-transposed, bf16) weights resident in VMEM."""
    kparams, (d_h, d_o_pad, d_out, n_hidden) = _prepare_kernel_params(params)
    w_in_t, b_in_p, w_hid_t, b_hid_p, w_out_t, b_out_p = kparams

    B, d_feature = features.shape
    x = features.astype(jnp.float32)   # bf16 cast happens in-kernel; no HBM pad pass

    # Batch tile: big enough to amortize per-step overhead / fill the MXU, but
    # shrink so the grid keeps >= 2 parallel steps (both v7x TCs) when B allows.
    bb = max(_SUBLANE, min(block_b, _round_up(pl.cdiv(B, 2), _SUBLANE)))
    grid = (pl.cdiv(B, bb),)           # partial last tile handled by pipeline masking

    # advisory cost estimate for XLA's scheduler
    flops = 2 * B * (d_feature * d_h + n_hidden * d_h * d_h + d_h * d_o_pad)
    param_bytes = sum(int(a.size) * a.dtype.itemsize for a in kparams)
    bytes_accessed = int(param_bytes + B * d_feature * 4 + B * d_o_pad * 2)

    # VMEM budget: params are single-buffered residents; x / out tiles are
    # double-buffered by the pipeline; headroom for activation temporaries and
    # compiler scratch; generation-aware cap with ~15% headroom.
    io_bytes = 2 * (bb * d_feature * 4) + 2 * (bb * d_o_pad * 2)
    act_bytes = 6 * bb * d_h * 4
    vmem_needed = param_bytes + io_bytes + act_bytes
    vmem_cap = _vmem_capacity_bytes()
    vmem_limit = int(min(max(2 * vmem_needed, 32 * 1024 * 1024),
                         int(vmem_cap * 0.85)))
    # TODO(synk): if param_bytes > ~0.5 * vmem_cap (large d_hidden, esp. v7x),
    # fall back to per-layer streamed hidden weights instead of resident VMEM.

    kernel = functools.partial(dnn_kernel, n_hidden_layers=n_hidden)

    def resident():
        # whole array placed in VMEM once, single copy, no per-step re-DMA
        return pl.BlockSpec(memory_space=pltpu.MemorySpace.VMEM)

    out = pl.pallas_call(
        kernel,
        out_shape=jax.ShapeDtypeStruct((B, d_o_pad), jnp.bfloat16),
        grid_spec=pltpu.PrefetchScalarGridSpec(
            num_scalar_prefetch=0,
            grid=grid,
            in_specs=[
                # batch tile of the f32 input features (full feature dim)
                pl.BlockSpec((bb, d_feature), lambda i: (i, 0)),
                # weights / biases: fully resident, single-buffered in VMEM
                resident(),   # w_in_t
                resident(),   # b_in_p
                resident(),   # w_hid_t
                resident(),   # b_hid_p
                resident(),   # w_out_t
                resident(),   # b_out_p
            ],
            out_specs=pl.BlockSpec((bb, d_o_pad), lambda i: (i, 0)),
        ),
        compiler_params=pltpu.CompilerParams(
            dimension_semantics=("parallel",),
            vmem_limit_bytes=vmem_limit),
        cost_estimate=pl.CostEstimate(flops=flops, transcendentals=0,
                                      bytes_accessed=bytes_accessed),
    )(x, w_in_t, b_in_p, w_hid_t, b_hid_p, w_out_t, b_out_p)

    # strip output-dim padding; kernel stored bf16 (halves HBM writeback),
    # return f32 to callers
    return out[:, :d_out].astype(jnp.float32)


# ----------------------------------------------------------------------------
# deterministic parameter init (mirrors DNN.initialize):
#   Linear weights: xavier_uniform_, biases filled with 0.01
#   OutputLayer linear: xavier_uniform_ weight, zero bias
# Params are kept in PyTorch layout [out_dim, in_dim], f32.
# ----------------------------------------------------------------------------
def xavier_uniform(key, out_dim, in_dim):
    limit = jnp.sqrt(6.0 / (in_dim + out_dim))
    return jax.random.uniform(key, (out_dim, in_dim), jnp.float32, -limit, limit)


def init_dnn_params(key, d_feature, d_hidden, n_hidden_layers, d_out):
    keys = jax.random.split(key, n_hidden_layers + 2)
    w_in = xavier_uniform(keys[0], d_hidden, d_feature)
    b_in = jnp.full((d_hidden,), 0.01, jnp.float32)
    w_hid = jnp.stack([xavier_uniform(keys[1 + i], d_hidden, d_hidden)
                       for i in range(n_hidden_layers)], axis=0)
    b_hid = jnp.full((n_hidden_layers, d_hidden), 0.01, jnp.float32)
    w_out = xavier_uniform(keys[-1], d_out, d_hidden)
    b_out = jnp.zeros((d_out,), jnp.float32)
    return w_in, b_in, w_hid, b_hid, w_out, b_out


def dnn_reference(features, params):
    """Pure-JAX f32 reference (PyTorch layout) for correctness checking."""
    w_in, b_in, w_hid, b_hid, w_out, b_out = params
    h = jnp.maximum(features @ w_in.T + b_in, 0.0)
    for i in range(w_hid.shape[0]):
        h = jnp.maximum(h @ w_hid[i].T + b_hid[i], 0.0)
    return h @ w_out.T + b_out


if __name__ == "__main__":
    # shapes consistent with the module defaults (d_hidden=128, 4 hidden layers)
    batch = 512              # 2 parallel grid steps of 256 -> feeds both v7x TCs
    d_feature = 64
    d_hidden = 128
    n_hidden_layers = 4
    n_lbs, n_tasks = 2, 3
    d_out = n_lbs * n_tasks

    key = jax.random.PRNGKey(0)
    k_x, k_p = jax.random.split(key)
    features = jax.random.normal(k_x, (batch, d_feature), jnp.float32)
    params = init_dnn_params(k_p, d_feature, d_hidden, n_hidden_layers, d_out)

    logits = dnn_forward(features, params, block_b=256)
    logits = jax.block_until_ready(logits)

    ref = dnn_reference(features, params)
    assert logits.shape == (batch, d_out)
    # bf16 matmul inputs + bf16 output store, f32 accumulation -> loosened tol
    max_err = float(jnp.max(jnp.abs(logits - ref)))
    assert jnp.allclose(logits, ref, atol=8e-2, rtol=8e-2), \
        f"mismatch vs reference (max abs err {max_err})"

    print("KERNEL_OK")
</pallas_src>

<mosaic_0001>
module attributes {stable_mosaic.version = 11 : i64} {
  func.func @dnn_kernel(%arg0: i32, %arg1: memref<256x64xf32, #tpu.memory_space<vmem>>, %arg2: memref<64x128xbf16, #tpu.memory_space<vmem>>, %arg3: memref<1x128xf32, #tpu.memory_space<vmem>>, %arg4: memref<4x128x128xbf16, #tpu.memory_space<vmem>>, %arg5: memref<4x128xf32, #tpu.memory_space<vmem>>, %arg6: memref<128x128xbf16, #tpu.memory_space<vmem>>, %arg7: memref<1x128xf32, #tpu.memory_space<vmem>>, %arg8: memref<256x128xbf16, #tpu.memory_space<vmem>>) attributes {dimension_semantics = [#tpu.dimension_semantics<parallel>], iteration_bounds = array<i64: 2>, scalar_prefetch = 0 : i64, scratch_operands = 0 : i64, tpu.core_type = #tpu.core_type<tc>, window_params = [{transform_indices = @transform_0, window_bounds = array<i64: 256, 64>}, {pipeline_mode = #tpu.pipeline_mode<synchronous>, transform_indices = @transform_1, window_bounds = array<i64: 64, 128>}, {pipeline_mode = #tpu.pipeline_mode<synchronous>, transform_indices = @transform_2, window_bounds = array<i64: 1, 128>}, {pipeline_mode = #tpu.pipeline_mode<synchronous>, transform_indices = @transform_3, window_bounds = array<i64: 4, 128, 128>}, {pipeline_mode = #tpu.pipeline_mode<synchronous>, transform_indices = @transform_4, window_bounds = array<i64: 4, 128>}, {pipeline_mode = #tpu.pipeline_mode<synchronous>, transform_indices = @transform_5, window_bounds = array<i64: 128, 128>}, {pipeline_mode = #tpu.pipeline_mode<synchronous>, transform_indices = @transform_6, window_bounds = array<i64: 1, 128>}, {transform_indices = @transform_7, window_bounds = array<i64: 256, 128>}]} {
    %c0 = arith.constant 0 : index
    %c0_0 = arith.constant 0 : index
    %0 = vector.load %arg1[%c0, %c0_0] : memref<256x64xf32, #tpu.memory_space<vmem>>, vector<256x64xf32>
    %1 = arith.truncf %0 : vector<256x64xf32> to vector<256x64xbf16>
    %c0_1 = arith.constant 0 : index
    %c0_2 = arith.constant 0 : index
    %2 = vector.load %arg2[%c0_1, %c0_2] : memref<64x128xbf16, #tpu.memory_space<vmem>>, vector<64x128xbf16>
    %cst = arith.constant dense<0.000000e+00> : vector<256x128xf32>
    %3 = tpu.matmul %1, %2, %cst {dimension_numbers = #tpu.dot_dimension_numbers<[1], [0], [0], [1], [0, 0, 1, 1], [], []>} : vector<256x64xbf16>, vector<64x128xbf16>, vector<256x128xf32> -> vector<256x128xf32>
    %c0_3 = arith.constant 0 : index
    %c0_4 = arith.constant 0 : index
    %4 = vector.load %arg3[%c0_3, %c0_4] : memref<1x128xf32, #tpu.memory_space<vmem>>, vector<1x128xf32>
    %5 = vector.broadcast %4 : vector<1x128xf32> to vector<256x128xf32>
    %6 = arith.addf %3, %5 : vector<256x128xf32>
    %cst_5 = arith.constant 0.000000e+00 : f32
    %7 = vector.broadcast %cst_5 : f32 to vector<256x128xf32>
    %8 = arith.maximumf %6, %7 : vector<256x128xf32>
    %9 = arith.truncf %8 : vector<256x128xf32> to vector<256x128xbf16>
    %c0_6 = arith.constant 0 : index
    %c0_7 = arith.constant 0 : index
    %c0_8 = arith.constant 0 : index
    %10 = vector.load %arg4[%c0_6, %c0_7, %c0_8] : memref<4x128x128xbf16, #tpu.memory_space<vmem>>, vector<1x128x128xbf16>
    %11 = vector.shape_cast %10 : vector<1x128x128xbf16> to vector<128x128xbf16>
    %cst_9 = arith.constant dense<0.000000e+00> : vector<256x128xf32>
    %12 = tpu.matmul %9, %11, %cst_9 {dimension_numbers = #tpu.dot_dimension_numbers<[1], [0], [0], [1], [0, 0, 1, 1], [], []>} : vector<256x128xbf16>, vector<128x128xbf16>, vector<256x128xf32> -> vector<256x128xf32>
    %c0_10 = arith.constant 0 : index
    %c0_11 = arith.constant 0 : index
    %13 = vector.load %arg5[%c0_10, %c0_11] : memref<4x128xf32, #tpu.memory_space<vmem>>, vector<1x128xf32>
    %14 = vector.shape_cast %13 : vector<1x128xf32> to vector<128xf32>
    %15 = vector.shape_cast %14 : vector<128xf32> to vector<1x128xf32>
    %16 = vector.broadcast %15 : vector<1x128xf32> to vector<256x128xf32>
    %17 = arith.addf %12, %16 : vector<256x128xf32>
    %cst_12 = arith.constant 0.000000e+00 : f32
    %18 = vector.broadcast %cst_12 : f32 to vector<256x128xf32>
    %19 = arith.maximumf %17, %18 : vector<256x128xf32>
    %20 = arith.truncf %19 : vector<256x128xf32> to vector<256x128xbf16>
    %c1 = arith.constant 1 : index
    %c0_13 = arith.constant 0 : index
    %c0_14 = arith.constant 0 : index
    %21 = vector.load %arg4[%c1, %c0_13, %c0_14] : memref<4x128x128xbf16, #tpu.memory_space<vmem>>, vector<1x128x128xbf16>
    %22 = vector.shape_cast %21 : vector<1x128x128xbf16> to vector<128x128xbf16>
    %cst_15 = arith.constant dense<0.000000e+00> : vector<256x128xf32>
    %23 = tpu.matmul %20, %22, %cst_15 {dimension_numbers = #tpu.dot_dimension_numbers<[1], [0], [0], [1], [0, 0, 1, 1], [], []>} : vector<256x128xbf16>, vector<128x128xbf16>, vector<256x128xf32> -> vector<256x128xf32>
    %c1_16 = arith.constant 1 : index
    %c0_17 = arith.constant 0 : index
    %24 = vector.load %arg5[%c1_16, %c0_17] : memref<4x128xf32, #tpu.memory_space<vmem>>, vector<1x128xf32>
    %25 = vector.shape_cast %24 : vector<1x128xf32> to vector<128xf32>
    %26 = vector.shape_cast %25 : vector<128xf32> to vector<1x128xf32>
    %27 = vector.broadcast %26 : vector<1x128xf32> to vector<256x128xf32>
    %28 = arith.addf %23, %27 : vector<256x128xf32>
    %cst_18 = arith.constant 0.000000e+00 : f32
    %29 = vector.broadcast %cst_18 : f32 to vector<256x128xf32>
    %30 = arith.maximumf %28, %29 : vector<256x128xf32>
    %31 = arith.truncf %30 : vector<256x128xf32> to vector<256x128xbf16>
    %c2 = arith.constant 2 : index
    %c0_19 = arith.constant 0 : index
    %c0_20 = arith.constant 0 : index
    %32 = vector.load %arg4[%c2, %c0_19, %c0_20] : memref<4x128x128xbf16, #tpu.memory_space<vmem>>, vector<1x128x128xbf16>
    %33 = vector.shape_cast %32 : vector<1x128x128xbf16> to vector<128x128xbf16>
    %cst_21 = arith.constant dense<0.000000e+00> : vector<256x128xf32>
    %34 = tpu.matmul %31, %33, %cst_21 {dimension_numbers = #tpu.dot_dimension_numbers<[1], [0], [0], [1], [0, 0, 1, 1], [], []>} : vector<256x128xbf16>, vector<128x128xbf16>, vector<256x128xf32> -> vector<256x128xf32>
    %c2_22 = arith.constant 2 : index
    %c0_23 = arith.constant 0 : index
    %35 = vector.load %arg5[%c2_22, %c0_23] : memref<4x128xf32, #tpu.memory_space<vmem>>, vector<1x128xf32>
    %36 = vector.shape_cast %35 : vector<1x128xf32> to vector<128xf32>
    %37 = vector.shape_cast %36 : vector<128xf32> to vector<1x128xf32>
    %38 = vector.broadcast %37 : vector<1x128xf32> to vector<256x128xf32>
    %39 = arith.addf %34, %38 : vector<256x128xf32>
    %cst_24 = arith.constant 0.000000e+00 : f32
    %40 = vector.broadcast %cst_24 : f32 to vector<256x128xf32>
    %41 = arith.maximumf %39, %40 : vector<256x128xf32>
    %42 = arith.truncf %41 : vector<256x128xf32> to vector<256x128xbf16>
    %c3 = arith.constant 3 : index
    %c0_25 = arith.constant 0 : index
    %c0_26 = arith.constant 0 : index
    %43 = vector.load %arg4[%c3, %c0_25, %c0_26] : memref<4x128x128xbf16, #tpu.memory_space<vmem>>, vector<1x128x128xbf16>
    %44 = vector.shape_cast %43 : vector<1x128x128xbf16> to vector<128x128xbf16>
    %cst_27 = arith.constant dense<0.000000e+00> : vector<256x128xf32>
    %45 = tpu.matmul %42, %44, %cst_27 {dimension_numbers = #tpu.dot_dimension_numbers<[1], [0], [0], [1], [0, 0, 1, 1], [], []>} : vector<256x128xbf16>, vector<128x128xbf16>, vector<256x128xf32> -> vector<256x128xf32>
    %c3_28 = arith.constant 3 : index
    %c0_29 = arith.constant 0 : index
    %46 = vector.load %arg5[%c3_28, %c0_29] : memref<4x128xf32, #tpu.memory_space<vmem>>, vector<1x128xf32>
    %47 = vector.shape_cast %46 : vector<1x128xf32> to vector<128xf32>
    %48 = vector.shape_cast %47 : vector<128xf32> to vector<1x128xf32>
    %49 = vector.broadcast %48 : vector<1x128xf32> to vector<256x128xf32>
    %50 = arith.addf %45, %49 : vector<256x128xf32>
    %cst_30 = arith.constant 0.000000e+00 : f32
    %51 = vector.broadcast %cst_30 : f32 to vector<256x128xf32>
    %52 = arith.maximumf %50, %51 : vector<256x128xf32>
    %53 = arith.truncf %52 : vector<256x128xf32> to vector<256x128xbf16>
    %c0_31 = arith.constant 0 : index
    %c0_32 = arith.constant 0 : index
    %54 = vector.load %arg6[%c0_31, %c0_32] : memref<128x128xbf16, #tpu.memory_space<vmem>>, vector<128x128xbf16>
    %cst_33 = arith.constant dense<0.000000e+00> : vector<256x128xf32>
    %55 = tpu.matmul %53, %54, %cst_33 {dimension_numbers = #tpu.dot_dimension_numbers<[1], [0], [0], [1], [0, 0, 1, 1], [], []>} : vector<256x128xbf16>, vector<128x128xbf16>, vector<256x128xf32> -> vector<256x128xf32>
    %c0_34 = arith.constant 0 : index
    %c0_35 = arith.constant 0 : index
    %56 = vector.load %arg7[%c0_34, %c0_35] : memref<1x128xf32, #tpu.memory_space<vmem>>, vector<1x128xf32>
    %57 = vector.broadcast %56 : vector<1x128xf32> to vector<256x128xf32>
    %58 = arith.addf %55, %57 : vector<256x128xf32>
    %59 = arith.truncf %58 : vector<256x128xf32> to vector<256x128xbf16>
    %c0_36 = arith.constant 0 : index
    %c0_37 = arith.constant 0 : index
    %60 = vector.load %arg8[%c0_36, %c0_37] : memref<256x128xbf16, #tpu.memory_space<vmem>>, vector<256x128xbf16>
    tpu.vector_store %arg8[%c0_36, %c0_37], %59 {strides = array<i32>} : memref<256x128xbf16, #tpu.memory_space<vmem>>, vector<256x128xbf16>,
    return
  }
  func.func @transform_0(%arg0: i32) -> (i32, i32) {
    %c0_i32 = arith.constant 0 : i32
    %c0_i32_0 = arith.constant 0 : i32
    return %arg0, %c0_i32 : i32, i32
  }
  func.func @transform_1(%arg0: i32) -> (i32, i32) {
    %c0_i32 = arith.constant 0 : i32
    %c0_i32_0 = arith.constant 0 : i32
    %c0_i32_1 = arith.constant 0 : i32
    return %c0_i32, %c0_i32_0 : i32, i32
  }
  func.func @transform_2(%arg0: i32) -> (i32, i32) {
    %c0_i32 = arith.constant 0 : i32
    %c0_i32_0 = arith.constant 0 : i32
    %c0_i32_1 = arith.constant 0 : i32
    return %c0_i32, %c0_i32_0 : i32, i32
  }
  func.func @transform_3(%arg0: i32) -> (i32, i32, i32) {
    %c0_i32 = arith.constant 0 : i32
    %c0_i32_0 = arith.constant 0 : i32
    %c0_i32_1 = arith.constant 0 : i32
    %c0_i32_2 = arith.constant 0 : i32
    return %c0_i32, %c0_i32_0, %c0_i32_1 : i32, i32, i32
  }
  func.func @transform_4(%arg0: i32) -> (i32, i32) {
    %c0_i32 = arith.constant 0 : i32
    %c0_i32_0 = arith.constant 0 : i32
    %c0_i32_1 = arith.constant 0 : i32
    return %c0_i32, %c0_i32_0 : i32, i32
  }
  func.func @transform_5(%arg0: i32) -> (i32, i32) {
    %c0_i32 = arith.constant 0 : i32
    %c0_i32_0 = arith.constant 0 : i32
    %c0_i32_1 = arith.constant 0 : i32
    return %c0_i32, %c0_i32_0 : i32, i32
  }
  func.func @transform_6(%arg0: i32) -> (i32, i32) {
    %c0_i32 = arith.constant 0 : i32
    %c0_i32_0 = arith.constant 0 : i32
    %c0_i32_1 = arith.constant 0 : i32
    return %c0_i32, %c0_i32_0 : i32, i32
  }
  func.func @transform_7(%arg0: i32) -> (i32, i32) {
    %c0_i32 = arith.constant 0 : i32
    %c0_i32_0 = arith.constant 0 : i32
    return %arg0, %c0_i32 : i32, i32
  }
}

</mosaic_0001>

<bundles_post_ra>
// kernel: tpu_custom_call.1
= control target key start
LH: loop header
LB: loop body
LE: loop exit
PB: predicated region body
PF: predicated region fallthrough
CT: control target
= control target key end

     0   :  { %12 = vsyncpa [#allocation3], 0  ;;  %s2757_s0 = inlined_call_operand.vmem [shape: f32[512,64], index: 0, kind: input, shape index: {}]   ;;  %s2758_s1 = inlined_call_operand.vmem [shape: bf16[64,128], index: 1, kind: input, shape index: {}]   ;;  %s2759_s2 = inlined_call_operand.vmem [shape: f32[1,128], index: 2, kind: input, shape index: {}]   ;;  %s2760_s3 = inlined_call_operand.vmem [shape: bf16[4,128,128], index: 3, kind: input, shape index: {}]   ;;  %s2761_s4 = inlined_call_operand.vmem [shape: f32[4,128], index: 4, kind: input, shape index: {}]   ;;  %s2762_s5 = inlined_call_operand.vmem [shape: bf16[128,128], index: 5, kind: input, shape index: {}]   ;;  %s2763_s6 = inlined_call_operand.vmem [shape: f32[1,128], index: 6, kind: input, shape index: {}]   ;;  %s2764_s7 = inlined_call_operand.hbm [shape: bf16[512,128], index: 7, kind: output, shape index: {}]  }
   0x1   :  { %14 = vsyncpa [#allocation3 + $0x1], 0  ;;  %s2222_s24 = smov 0   ;;  %s2224_s25 = smov 0  }
   0x2   :  { %s2226_s26 = smov 0   ;;  %s2228_s27 = smov 0  }
   0x3 LB: > { %s2243_s28 = sadd.s32 4294967295, %s2178_s27   ;;  %s1665_s29 = sadd.s32 4294967294, %s2178_s27   ;;  %s2178_s27 = sphi %s2228_s27, %s2770_s27   ;;  %s2174_s26 = sphi %s2226_s26, %s2769_s26   ;;  %s2170_s25 = sphi %s2224_s25, %s2768_s25   ;;  %s2166_s24 = sphi %s2222_s24, %s2767_s24  }
   0x4   : > { %s2247_s30 = sadd.s32 1, %s2178_s27   ;;  %s179_s8 = sadd.s32 1, %s2174_s26 }
   0x5   : > { %s176_s9 = ssub.s32 %s2178_s27, %s2247_s30  ;;  %p189_p0 = scmp.ne.s32.totalorder %s2174_s26, %s2170_s25 }
   0x6   : > { %p177_p1 = scmp.eq.s32.totalorder %s176_s9, 0  ;;  %p190_p2 = scmp.eq.s32.totalorder %s2243_s28, 1 }
   0x7   : > { %p195_p3 = scmp.ne.s32.totalorder %s2170_s25, %s2166_s24  ;;  %p196_p4 = scmp.eq.s32.totalorder %s1665_s29, 1 }
   0x8   : > { %s2258_s10 = scalar_select %p177_p1, %s2174_s26, %s179_s8  }
   0x9   : > { %p2260_p5 = por %p190_p2, %p189_p0  ;;  %p2264_p6 = por %p196_p4, %p195_p3 }
   0xa   : > { %p1668_p7 = scmp.ge.s32.totalorder %s2178_s27, 1  ;;  %p241_p8 = scmp.lt.s32.totalorder %s2178_s27, 3 }
   0xc   : > { %p242_p9 = pnand %p1668_p7, %p241_p8 }
   0xd   : > { %s1670_s15 = sshll.u32 (!%p242_p9), %s2243_s28, 5  ;;  %s1961_s29 = sshll.u32 (!%p242_p9), %s2243_s28, 7 }
   0xe   : > { %245 = sbr.rel (%p242_p9) target bundleno = 1245 (0x4dd), region = 48  ;;  %p274_p10 = scmp.lt.s32.totalorder (!%p242_p9), %s1670_s15, 63 }
   0xf   : > { %s1599_s13 = scalar_lea.hbm (!%p242_p9), %s2764_s7, %s1961_s29  ;;  %s2136_s20 = scalar_lea.hbm (!%p242_p9), %s2764_s7, 256 }
  0x13   : > { %v1920_v0 = vld [vmem:[%s2758_s1 + $0x18] sm:$0xff]  ;;  %v1919_v1 = vld [vmem:[%s2758_s1 + $0x10] sm:$0xff]  ;;  %s2772_s15 = smov (!%p274_p10, %s1670_s15), 63  ;;  %v1918_v2 = vld [vmem:[%s2758_s1 + $0x8] sm:$0xff]  ;;  %vm365_vm0 = vcmask 523264  }
  0x14   : > { %418 = vmatpush.bf16.msra.mxu0 %v1920_v0  ;;  %2057 = vmatpush.bf16.msra.mxu3 %v1920_v0  ;;  %s1671_s18 = sshll.u32 %s2772_s15, 3  ;;  %v1917_v3 = vld [vmem:[%s2758_s1] sm:$0xff]  ;;  %v1928_v19 = vld [vmem:[%s2760_s3 + $0x38] sm:$0xff]  ;;  %v1927_v23 = vld [vmem:[%s2760_s3 + $0x30] sm:$0xff]  ;;  %s1602_s15 = sshll.u32 %s1599_s13, 4  ;;  %s1603_s15 = int_to_ptr.hbm [resolvable:$true] %s1602_s15 }
  0x15   : > { %s2283_s23 = scalar_lea.vmem %s2757_s0, %s1671_s18  ;;  %617 = vmatpush.bf16.msra.mxu1 %v1928_v19  ;;  %2061 = vmatpush.bf16.msra.mxu2 %v1928_v19  ;;  %v1926_v24 = vld [vmem:[%s2760_s3 + $0x28] sm:$0xff]  ;;  %v1925_v25 = vld [vmem:[%s2760_s3 + $0x20] sm:$0xff]  ;;  %v1924_v28 = vld [vmem:[%s2760_s3 + $0x18] sm:$0xff]  ;;  %s270_s18 = sand.u32 1, %s2170_s25  }
  0x16   : > { %v281_v4 = vld [vmem:[%s2283_s23] sm:$0xff]  ;;  %v282_v5 = vld [vmem:[%s2283_s23 + $0x8] sm:$0xff]  ;;  %v283_v7 = vld [vmem:[%s2283_s23 + $0x10] sm:$0xff]  ;;  %s1669_s21 = sshll.u32 %s270_s18, 7  ;;  %s1588_s16 = scalar_lea.sflag [#allocation3], %s270_s18 }
  0x17   : > { %v313_v6 = vpack.c.bf16 %v282_v5, %v281_v4  ;;  %v284_v8 = vld [vmem:[%s2283_s23 + $0x18] sm:$0xff]  ;;  %v285_v10 = vld [vmem:[%s2283_s23 + $0x20] sm:$0xff]  ;;  %v286_v11 = vld [vmem:[%s2283_s23 + $0x28] sm:$0xff]  ;;  %s2662_s22 = scalar_lea.vmem [#allocation2], %s1669_s21 }
  0x18   : > { %419 = vmatpush.bf16.msra.mxu0 %v1919_v1  ;;  %2058 = vmatpush.bf16.msra.mxu3 %v1919_v1  ;;  %v314_v9 = vpack.c.bf16 %v284_v8, %v283_v7  ;;  %v315_v12 = vpack.c.bf16 %v286_v11, %v285_v10  ;;  %v287_v13 = vld [vmem:[%s2283_s23 + $0x30] sm:$0xff]  ;;  %v288_v14 = vld [vmem:[%s2283_s23 + $0x38] sm:$0xff]  ;;  %v289_v16 = vld [vmem:[%s2283_s23 + $0x40] sm:$0xff]  ;;  %s1600_s14 = sshll.u32 %s2662_s22, 4  ;;  %s1601_s14 = int_to_ptr.vmem [resolvable:$true] %s1600_s14 }
  0x19   : > { %v316_v15 = vpack.c.bf16 %v288_v14, %v287_v13  ;;  %v290_v17 = vld [vmem:[%s2283_s23 + $0x48] sm:$0xff]  ;;  %v291_v20 = vld [vmem:[%s2283_s23 + $0x50] sm:$0xff]  ;;  %v292_v21 = vld [vmem:[%s2283_s23 + $0x58] sm:$0xff]  ;;  %618 = vmatpush.bf16.msra.mxu1 %v1927_v23  ;;  %2062 = vmatpush.bf16.msra.mxu2 %v1927_v23 }
  0x1a   : > { %v317_v18 = vpack.c.bf16 %v290_v17, %v289_v16  ;;  %v318_v22 = vpack.c.bf16 %v292_v21, %v291_v20  ;;  %v293_v26 = vld [vmem:[%s2283_s23 + $0x60] sm:$0xff]  ;;  %v294_v27 = vld [vmem:[%s2283_s23 + $0x68] sm:$0xff]  ;;  %v1923_v30 = vld [vmem:[%s2760_s3 + $0x10] sm:$0xff] }
  0x1b   : > { %v319_v29 = vpack.c.bf16 %v294_v27, %v293_v26  ;;  %v299_v31 = vld [vmem:[%s2283_s23 + $0x90] sm:$0xff]  ;;  %v300_v32 = vld [vmem:[%s2283_s23 + $0x98] sm:$0xff]  ;;  %v1922_v34 = vld [vmem:[%s2760_s3 + $0x8] sm:$0xff] }
  0x1c   : > { %420 = vmatpush.bf16.msra.mxu0 %v1918_v2  ;;  %2059 = vmatpush.bf16.msra.mxu3 %v1918_v2  ;;  %v322_v33 = vpack.c.bf16 %v300_v32, %v299_v31  ;;  %v1921_v35 = vld [vmem:[%s2760_s3] sm:$0xff]  ;;  %v295_v36 = vld [vmem:[%s2283_s23 + $0x70] sm:$0xff]  ;;  %v296_v37 = vld [vmem:[%s2283_s23 + $0x78] sm:$0xff] }
  0x1d   : > { %619 = vmatpush.bf16.msra.mxu1 %v1926_v24  ;;  %2063 = vmatpush.bf16.msra.mxu2 %v1926_v24  ;;  %v320_v38 = vpack.c.bf16 %v296_v37, %v295_v36  ;;  %v301_v39 = vld [vmem:[%s2283_s23 + $0xa0] sm:$0xff]  ;;  %v302_v40 = vld [vmem:[%s2283_s23 + $0xa8] sm:$0xff]  ;;  %v303_v46 = vld [vmem:[%s2283_s23 + $0xb0] sm:$0xff] }
  0x1e   : > { %v323_v41 = vpack.c.bf16 %v302_v40, %v301_v39  ;;  %v297_v42 = vld [vmem:[%s2283_s23 + $0x80] sm:$0xff]  ;;  %v298_v43 = vld [vmem:[%s2283_s23 + $0x88] sm:$0xff]  ;;  %v304_v47 = vld [vmem:[%s2283_s23 + $0xb8] sm:$0xff] }
  0x1f   : > { %v321_v44 = vpack.c.bf16 %v298_v43, %v297_v42  ;;  %v2349_v48 = vld [vmem:[%s2759_s2] ss:$0 sm:$0xff]  ;;  %v324_v49 = vpack.c.bf16 %v304_v47, %v303_v46  ;;  %v306_v58 = vld [vmem:[%s2283_s23 + $0xc8] sm:$0xff]  ;;  %v308_v4 = vld [vmem:[%s2283_s23 + $0xd8] sm:$0xff] }
  0x20   : > { %421 = vmatpush.bf16.msra.mxu0 %v1917_v3  ;;  %2060 = vmatpush.bf16.msra.mxu3 %v1917_v3  ;;  %v305_v57 = vld [vmem:[%s2283_s23 + $0xc0] sm:$0xff]  ;;  %v307_v3 = vld [vmem:[%s2283_s23 + $0xd0] sm:$0xff]  ;;  %v310_v14 = vld [vmem:[%s2283_s23 + $0xe8] sm:$0xff] }
  0x21   : > { %620 = vmatpush.bf16.msra.mxu1 %v1925_v25  ;;  %2064 = vmatpush.bf16.msra.mxu2 %v1925_v25  ;;  %v325_v59 = vpack.c.bf16 %v306_v58, %v305_v57  ;;  %v326_v5 = vpack.c.bf16 %v308_v4, %v307_v3  ;;  %v309_v13 = vld [vmem:[%s2283_s23 + $0xe0] sm:$0xff]  ;;  %v311_v23 = vld [vmem:[%s2283_s23 + $0xf0] sm:$0xff]  ;;  %v312_v24 = vld [vmem:[%s2283_s23 + $0xf8] sm:$0xff]  ;;  %s2130_s23 = sshra.s32 %s1603_s15, 4  ;;  %s2131_s23 = int_to_ptr.hbm [resolvable:$true] %s2130_s23 }
  0x22   : > { %v328_v25 = vpack.c.bf16 %v312_v24, %v311_v23  ;;  %v1936_v46 = vld [vmem:[%s2760_s3 + $0x78] sm:$0xff]  ;;  %v1935_v57 = vld [vmem:[%s2760_s3 + $0x70] sm:$0xff]  ;;  %v1934_v3 = vld [vmem:[%s2760_s3 + $0x68] sm:$0xff]  ;;  %s2132_s28 = scalar_lea.hbm %s2131_s23, 128  ;;  %p2137_p0 = scmp.lt.s32.totalorder %s2131_s23, %s2764_s7 }
  0x23   : > { %1688 = vmatmul.msk.bf16.vlgmr.msra.gmra.mxu0 %vm365_vm0, %v313_v6  ;;  %1697 = vmatmul.msk.bf16.vlgmr.msra.gmra.mxu3 %vm365_vm0, %v322_v33  ;;  %p2133_p11 = scmp.ne.s32.totalorder %s2131_s23, %s2132_s28  ;;  %p2138_p1 = scmp.lt.s32.totalorder %s2136_s20, %s2132_s28 }
  0x25   : > { %621 = vmatpush.bf16.msra.mxu1 %v1924_v28  ;;  %2065 = vmatpush.bf16.msra.mxu2 %v1924_v28  ;;  %p2134_p12 = pnand %p2133_p11, %p2260_p5  ;;  %p2139_p2 = por %p2138_p1, %p2137_p0 }
  0x27   : > { %p2135_p13 = pneg %p2134_p12 }
  0x29   : > { %622 = vmatpush.bf16.msra.mxu1 %v1923_v30  ;;  %2066 = vmatpush.bf16.msra.mxu2 %v1923_v30  ;;  %p2140_p3 = pnand %p2139_p2, %p2135_p13 }
  0x2d   : > { %623 = vmatpush.bf16.msra.mxu1 %v1922_v34  ;;  %2067 = vmatpush.bf16.msra.mxu2 %v1922_v34 }
  0x31   : > { %624 = vmatpush.bf16.msra.mxu1 %v1921_v35  ;;  %2068 = vmatpush.bf16.msra.mxu2 %v1921_v35 }
  0x33   : > { %1689 = vmatmul.msk.bf16.gmra.mxu0 %vm365_vm0, %v314_v9  ;;  %1698 = vmatmul.msk.bf16.gmra.mxu3 %vm365_vm0, %v323_v41 }
  0x35   : > { %821 = vmatpush.bf16.msrb.mxu2 %v1936_v46 }
  0x39   : > { %822 = vmatpush.bf16.msrb.mxu2 %v1935_v57 }
  0x3d   : > { %823 = vmatpush.bf16.msrb.mxu2 %v1934_v3 }
  0x43   : > { %1690 = vmatmul.msk.bf16.gmra.mxu0 %vm365_vm0, %v315_v12  ;;  %1699 = vmatmul.msk.bf16.gmra.mxu3 %vm365_vm0, %v324_v49 }
  0x53   : > { %1691 = vmatmul.msk.bf16.gmra.mxu0 %vm365_vm0, %v316_v15  ;;  %1700 = vmatmul.msk.bf16.gmra.mxu3 %vm365_vm0, %v325_v59  ;;  %v327_v15 = vpack.c.bf16 %v310_v14, %v309_v13 }
  0x63   : > { %1692 = vmatmul.msk.bf16.gmra.mxu0 %vm365_vm0, %v317_v18  ;;  %1701 = vmatmul.msk.bf16.gmra.mxu3 %vm365_vm0, %v326_v5 }
  0x73   : > { %1693 = vmatmul.msk.bf16.gmra.mxu0 %vm365_vm0, %v318_v22  ;;  %1702 = vmatmul.msk.bf16.gmra.mxu3 %vm365_vm0, %v327_v15 }
  0x83   : > { %1694 = vmatmul.msk.bf16.gmra.mxu0 %vm365_vm0, %v319_v29  ;;  %1703 = vmatmul.msk.bf16.gmra.mxu3 %vm365_vm0, %v328_v25  ;;  %v1931_v25 = vld [vmem:[%s2760_s3 + $0x50] sm:$0xff] }
  0x93   : > { %1695 = vmatmul.msk.bf16.gmra.mxu0 %vm365_vm0, %v320_v38 }
  0xa0   : > { %v423_v45 = vpop.f32.mrf.mxu0 }
  0xa1   : > { %v424_v50 = vadd.f32 %v2349_v48, %v423_v45 }
  0xa3   : > { %1696 = vmatmul.msk.bf16.gmra.mxu0 %vm365_vm0, %v321_v44  ;;  %v503_v53 = vmax.f32 %v424_v50, 0.0 }
  0xa6   : > { %v468_v49 = vpop.f32.mrf.mxu3 }
  0xa7   : > { %v469_v4 = vadd.f32 %v2349_v48, %v468_v49 }
  0xa8   : > { %v425_v51 = vpop.f32.mrf.mxu0 }
  0xa9   : > { %v426_v52 = vadd.f32 %v2349_v48, %v425_v51 }
  0xab   : > { %v504_v54 = vmax.f32 %v426_v52, 0.0 }
  0xad   : > { %v535_v55 = vpack.c.bf16 %v504_v54, %v503_v53 }
  0xae   : > { %v470_v53 = vpop.f32.mrf.mxu3 }
  0xaf   : > { %625 = vmatmul.bf16.vlgmr.msra.gmra.mxu1 %v535_v55  ;;  %v471_v5 = vadd.f32 %v2349_v48, %v470_v53 }
  0xb0   : > { %v428_v56 = vpop.f32.mrf.mxu0 }
  0xb1   : > { %v429_v60 = vadd.f32 %v2349_v48, %v428_v56 }
  0xb3   : > { %v505_v63 = vmax.f32 %v429_v60, 0.0 }
  0xb6   : > { %v473_v59 = vpop.f32.mrf.mxu3 }
  0xb8   : > { %v430_v61 = vpop.f32.mrf.mxu0 }
  0xb9   : > { %v431_v62 = vadd.f32 %v2349_v48, %v430_v61 }
  0xbb   : > { %v506_v0 = vmax.f32 %v431_v62, 0.0 }
  0xbd   : > { %v536_v1 = vpack.c.bf16 %v506_v0, %v505_v63 }
  0xbf   : > { %630 = vmatmul.bf16.gmra.mxu1 %v536_v1 }
  0xc0   : > { %v433_v2 = vpop.f32.mrf.mxu0 }
  0xc1   : > { %v434_v6 = vadd.f32 %v2349_v48, %v433_v2  ;;  %v475_v2 = vpop.f32.mrf.mxu3 }
  0xc2   : > { %v476_v13 = vadd.f32 %v2349_v48, %v475_v2 }
  0xc3   : > { %v507_v9 = vmax.f32 %v434_v6, 0.0 }
  0xc4   : > { %v524_v15 = vmax.f32 %v476_v13, 0.0 }
  0xc8   : > { %v435_v7 = vpop.f32.mrf.mxu0 }
  0xc9   : > { %v436_v8 = vadd.f32 %v2349_v48, %v435_v7  ;;  %v478_v6 = vpop.f32.mrf.mxu3  ;;  %v521_v7 = vmax.f32 %v469_v4, 0.0 }
  0xcb   : > { %v508_v10 = vmax.f32 %v436_v8, 0.0  ;;  %v522_v8 = vmax.f32 %v471_v5, 0.0 }
  0xcd   : > { %v537_v11 = vpack.c.bf16 %v508_v10, %v507_v9  ;;  %v544_v9 = vpack.c.bf16 %v522_v8, %v521_v7  ;;  %v1933_v10 = vld [vmem:[%s2760_s3 + $0x60] sm:$0xff] }
  0xce   : > { %824 = vmatpush.bf16.msrb.mxu2 %v1933_v10 }
  0xcf   : > { %635 = vmatmul.bf16.gmra.mxu1 %v537_v11 }
  0xd0   : > { %v438_v12 = vpop.f32.mrf.mxu0 }
  0xd1   : > { %v439_v16 = vadd.f32 %v2349_v48, %v438_v12  ;;  %v480_v11 = vpop.f32.mrf.mxu3  ;;  %v474_v12 = vadd.f32 %v2349_v48, %v473_v59  ;;  %v2424_v59 = vld [vmem:[%s2761_s4] ss:$0 sm:$0xff] }
  0xd3   : > { %v509_v19 = vmax.f32 %v439_v16, 0.0  ;;  %v523_v14 = vmax.f32 %v474_v12, 0.0 }
  0xd8   : > { %v440_v17 = vpop.f32.mrf.mxu0 }
  0xd9   : > { %v441_v18 = vadd.f32 %v2349_v48, %v440_v17  ;;  %v483_v16 = vpop.f32.mrf.mxu3  ;;  %v545_v17 = vpack.c.bf16 %v524_v15, %v523_v14  ;;  %v1943_v15 = vld [vmem:[%s2760_s3 + $0xb0] sm:$0xff] }
  0xdb   : > { %v510_v20 = vmax.f32 %v441_v18, 0.0  ;;  %v1932_v18 = vld [vmem:[%s2760_s3 + $0x58] sm:$0xff] }
  0xdc   : > { %825 = vmatpush.bf16.msrb.mxu2 %v1932_v18 }
  0xdd   : > { %v538_v21 = vpack.c.bf16 %v510_v20, %v509_v19  ;;  %v479_v19 = vadd.f32 %v2349_v48, %v478_v6  ;;  %v481_v20 = vadd.f32 %v2349_v48, %v480_v11 }
  0xdf   : > { %640 = vmatmul.bf16.gmra.mxu1 %v538_v21  ;;  %v526_v23 = vmax.f32 %v481_v20, 0.0 }
  0xe0   : > { %v443_v22 = vpop.f32.mrf.mxu0  ;;  %826 = vmatpush.bf16.msrb.mxu2 %v1931_v25 }
  0xe1   : > { %v444_v26 = vadd.f32 %v2349_v48, %v443_v22  ;;  %v485_v21 = vpop.f32.mrf.mxu3  ;;  %v525_v22 = vmax.f32 %v479_v19, 0.0 }
  0xe3   : > { %v511_v29 = vmax.f32 %v444_v26, 0.0  ;;  %v546_v24 = vpack.c.bf16 %v526_v23, %v525_v22 }
  0xe8   : > { %v445_v27 = vpop.f32.mrf.mxu0 }
  0xe9   : > { %v446_v28 = vadd.f32 %v2349_v48, %v445_v27  ;;  %v488_v26 = vpop.f32.mrf.mxu3  ;;  %v484_v27 = vadd.f32 %v2349_v48, %v483_v16 }
  0xeb   : > { %v512_v30 = vmax.f32 %v446_v28, 0.0  ;;  %v486_v28 = vadd.f32 %v2349_v48, %v485_v21 }
  0xed   : > { %v539_v31 = vpack.c.bf16 %v512_v30, %v511_v29  ;;  %v527_v29 = vmax.f32 %v484_v27, 0.0  ;;  %v528_v30 = vmax.f32 %v486_v28, 0.0 }
  0xef   : > { %645 = vmatmul.bf16.gmra.mxu1 %v539_v31 }
  0xf0   : > { %v448_v32 = vpop.f32.mrf.mxu0 }
  0xf1   : > { %v449_v33 = vadd.f32 %v2349_v48, %v448_v32  ;;  %v490_v31 = vpop.f32.mrf.mxu3  ;;  %v547_v32 = vpack.c.bf16 %v528_v30, %v527_v29  ;;  %v1942_v30 = vld [vmem:[%s2760_s3 + $0xa8] sm:$0xff] }
  0xf3   : > { %v513_v36 = vmax.f32 %v449_v33, 0.0  ;;  %v1930_v33 = vld [vmem:[%s2760_s3 + $0x48] sm:$0xff] }
  0xf4   : > { %827 = vmatpush.bf16.msrb.mxu2 %v1930_v33 }
  0xf8   : > { %v450_v34 = vpop.f32.mrf.mxu0 }
  0xf9   : > { %v451_v35 = vadd.f32 %v2349_v48, %v450_v34  ;;  %v493_v34 = vpop.f32.mrf.mxu3 }
  0xfb   : > { %v514_v37 = vmax.f32 %v451_v35, 0.0  ;;  %v489_v35 = vadd.f32 %v2349_v48, %v488_v26 }
  0xfd   : > { %v540_v38 = vpack.c.bf16 %v514_v37, %v513_v36  ;;  %v491_v36 = vadd.f32 %v2349_v48, %v490_v31  ;;  %v529_v37 = vmax.f32 %v489_v35, 0.0 }
  0xff   : > { %650 = vmatmul.bf16.gmra.mxu1 %v540_v38  ;;  %v530_v38 = vmax.f32 %v491_v36, 0.0 }
 0x100   : > { %v453_v39 = vpop.f32.mrf.mxu0 }
 0x101   : > { %v454_v40 = vadd.f32 %v2349_v48, %v453_v39 }
 0x103   : > { %v515_v43 = vmax.f32 %v454_v40, 0.0  ;;  %v548_v40 = vpack.c.bf16 %v530_v38, %v529_v37 }
 0x108   : > { %v455_v41 = vpop.f32.mrf.mxu0 }
 0x109   : > { %v456_v42 = vadd.f32 %v2349_v48, %v455_v41  ;;  %v495_v41 = vpop.f32.mrf.mxu3 }
 0x10b   : > { %v516_v44 = vmax.f32 %v456_v42, 0.0  ;;  %v1929_v42 = vld [vmem:[%s2760_s3 + $0x40] sm:$0xff] }
 0x10c   : > { %828 = vmatpush.bf16.msrb.mxu2 %v1929_v42 }
 0x10d   : > { %v541_v45 = vpack.c.bf16 %v516_v44, %v515_v43  ;;  %v494_v43 = vadd.f32 %v2349_v48, %v493_v34  ;;  %v496_v44 = vadd.f32 %v2349_v48, %v495_v41 }
 0x10f   : > { %655 = vmatmul.bf16.gmra.mxu1 %v541_v45  ;;  %v532_v49 = vmax.f32 %v496_v44, 0.0  ;;  %v1941_v44 = vld [vmem:[%s2760_s3 + $0xa0] sm:$0xff] }
 0x110   : > { %v458_v47 = vpop.f32.mrf.mxu0 }
 0x111   : > { %v459_v50 = vadd.f32 %v2349_v48, %v458_v47  ;;  %v498_v46 = vpop.f32.mrf.mxu3  ;;  %v531_v47 = vmax.f32 %v494_v43, 0.0 }
 0x112   : > { %v499_v53 = vadd.f32 %v2349_v48, %v498_v46 }
 0x113   : > { %v517_v54 = vmax.f32 %v459_v50, 0.0  ;;  %v549_v50 = vpack.c.bf16 %v532_v49, %v531_v47 }
 0x118   : > { %v460_v51 = vpop.f32.mrf.mxu0 }
 0x119   : > { %v461_v52 = vadd.f32 %v2349_v48, %v460_v51 }
 0x11b   : > { %v518_v55 = vmax.f32 %v461_v52, 0.0  ;;  %v500_v52 = vpop.f32.mrf.mxu3 }
 0x11d   : > { %v542_v56 = vpack.c.bf16 %v518_v55, %v517_v54  ;;  %v501_v54 = vadd.f32 %v2349_v48, %v500_v52  ;;  %v533_v55 = vmax.f32 %v499_v53, 0.0 }
 0x11f   : > { %660 = vmatmul.bf16.gmra.mxu1 %v542_v56  ;;  %v534_v56 = vmax.f32 %v501_v54, 0.0 }
 0x120   : > { %v463_v58 = vpop.f32.mrf.mxu0 }
 0x121   : > { %v464_v60 = vadd.f32 %v2349_v48, %v463_v58  ;;  %v550_v58 = vpack.c.bf16 %v534_v56, %v533_v55 }
 0x123   : > { %v519_v63 = vmax.f32 %v464_v60, 0.0 }
 0x128   : > { %v465_v61 = vpop.f32.mrf.mxu0 }
 0x129   : > { %v466_v62 = vadd.f32 %v2349_v48, %v465_v61  ;;  %v1944_v48 = vld [vmem:[%s2760_s3 + $0xb8] sm:$0xff] }
 0x12a   : > { %1025 = vmatpush.bf16.msrb.mxu3 %v1944_v48 }
 0x12b   : > { %v520_v0 = vmax.f32 %v466_v62, 0.0 }
 0x12c   : > { %v626_v39 = vpop.f32.mrf.mxu1 }
 0x12d   : > { %v543_v1 = vpack.c.bf16 %v520_v0, %v519_v63  ;;  %v627_v62 = vadd.f32 %v2424_v59, %v626_v39 }
 0x12e   : > { %1026 = vmatpush.bf16.msrb.mxu3 %v1943_v15  ;;  %v1938_v15 = vld [vmem:[%s2760_s3 + $0x88] sm:$0xff] }
 0x12f   : > { %665 = vmatmul.bf16.vlgmr.msra.gmra.mxu2 %v543_v1  ;;  %v706_v0 = vmax.f32 %v627_v62, 0.0 }
 0x132   : > { %1027 = vmatpush.bf16.msrb.mxu3 %v1942_v30 }
 0x134   : > { %v628_v45 = vpop.f32.mrf.mxu1 }
 0x135   : > { %v629_v61 = vadd.f32 %v2424_v59, %v628_v45 }
 0x136   : > { %1028 = vmatpush.bf16.msrb.mxu3 %v1941_v44  ;;  %v1952_v44 = vld [vmem:[%s2760_s3 + $0xf8] sm:$0xff] }
 0x137   : > { %v707_v63 = vmax.f32 %v629_v61, 0.0  ;;  %1229 = vmatpush.bf16.msrb.mxu0 %v1952_v44 }
 0x139   : > { %v738_v1 = vpack.c.bf16 %v707_v63, %v706_v0 }
 0x13c   : > { %v631_v51 = vpop.f32.mrf.mxu1 }
 0x13d   : > { %v632_v5 = vadd.f32 %v2424_v59, %v631_v51 }
 0x13f   : > { %670 = vmatmul.bf16.gmra.mxu2 %v544_v9  ;;  %v708_v10 = vmax.f32 %v632_v5, 0.0 }
 0x144   : > { %v633_v57 = vpop.f32.mrf.mxu1 }
 0x145   : > { %v634_v4 = vadd.f32 %v2424_v59, %v633_v57 }
 0x147   : > { %v709_v7 = vmax.f32 %v634_v4, 0.0 }
 0x149   : > { %v739_v14 = vpack.c.bf16 %v709_v7, %v708_v10 }
 0x14c   : > { %v636_v60 = vpop.f32.mrf.mxu1 }
 0x14d   : > { %v637_v20 = vadd.f32 %v2424_v59, %v636_v60 }
 0x14f   : > { %675 = vmatmul.bf16.gmra.mxu2 %v545_v17 }
 0x154   : > { %v638_v2 = vpop.f32.mrf.mxu1 }
 0x155   : > { %v639_v19 = vadd.f32 %v2424_v59, %v638_v2  ;;  %v1939_v2 = vld [vmem:[%s2760_s3 + $0x90] sm:$0xff] }
 0x157   : > { %v711_v21 = vmax.f32 %v639_v19, 0.0 }
 0x15c   : > { %v641_v6 = vpop.f32.mrf.mxu1 }
 0x15d   : > { %v642_v35 = vadd.f32 %v2424_v59, %v641_v6 }
 0x15f   : > { %680 = vmatmul.bf16.gmra.mxu2 %v546_v24  ;;  %v710_v24 = vmax.f32 %v637_v20, 0.0  ;;  %v712_v39 = vmax.f32 %v642_v35, 0.0 }
 0x161   : > { %v740_v29 = vpack.c.bf16 %v711_v21, %v710_v24 }
 0x164   : > { %v643_v17 = vpop.f32.mrf.mxu1 }
 0x165   : > { %v644_v33 = vadd.f32 %v2424_v59, %v643_v17 }
 0x167   : > { %v713_v36 = vmax.f32 %v644_v33, 0.0 }
 0x169   : > { %v741_v43 = vpack.c.bf16 %v713_v36, %v712_v39 }
 0x16c   : > { %v646_v26 = vpop.f32.mrf.mxu1 }
 0x16d   : > { %v647_v51 = vadd.f32 %v2424_v59, %v646_v26 }
 0x16f   : > { %685 = vmatmul.bf16.gmra.mxu2 %v547_v32  ;;  %v714_v56 = vmax.f32 %v647_v51, 0.0 }
 0x174   : > { %v648_v34 = vpop.f32.mrf.mxu1 }
 0x175   : > { %v649_v49 = vadd.f32 %v2424_v59, %v648_v34 }
 0x177   : > { %v715_v52 = vmax.f32 %v649_v49, 0.0 }
 0x179   : > { %v742_v61 = vpack.c.bf16 %v715_v52, %v714_v56 }
 0x17c   : > { %v651_v46 = vpop.f32.mrf.mxu1 }
 0x17d   : > { %v652_v48 = vadd.f32 %v2424_v59, %v651_v46 }
 0x17f   : > { %690 = vmatmul.bf16.gmra.mxu2 %v548_v40  ;;  %v716_v6 = vmax.f32 %v652_v48, 0.0 }
 0x184   : > { %v653_v54 = vpop.f32.mrf.mxu1 }
 0x18c   : > { %v656_v0 = vpop.f32.mrf.mxu1 }
 0x18d   : > { %v657_v17 = vadd.f32 %v2424_v59, %v656_v0 }
 0x18f   : > { %695 = vmatmul.bf16.gmra.mxu2 %v549_v50  ;;  %v1940_v50 = vld [vmem:[%s2760_s3 + $0x98] sm:$0xff] }
 0x190   : > { %1029 = vmatpush.bf16.msrb.mxu3 %v1940_v50 }
 0x194   : > { %1030 = vmatpush.bf16.msrb.mxu3 %v1939_v2 }
 0x198   : > { %1031 = vmatpush.bf16.msrb.mxu3 %v1938_v15 }
 0x19f   : > { %700 = vmatmul.bf16.gmra.mxu2 %v550_v58 }
 0x1af   : > { %829 = vmatmul.bf16.vlgmr.msrb.gmra.mxu2 %v738_v1  ;;  %v654_v1 = vadd.f32 %v2424_v59, %v653_v54  ;;  %v2505_v54 = vld [vmem:[%s2761_s4 + $0x1] ss:$0 sm:$0xff] }
 0x1b2   : > { %v666_v3 = vpop.f32.mrf.mxu2 }
 0x1b3   : > { %v667_v8 = vadd.f32 %v2424_v59, %v666_v3  ;;  %v717_v3 = vmax.f32 %v654_v1, 0.0 }
 0x1b5   : > { %v722_v12 = vmax.f32 %v667_v8, 0.0  ;;  %v743_v10 = vpack.c.bf16 %v717_v3, %v716_v6 }
 0x1ba   : > { %v668_v9 = vpop.f32.mrf.mxu2 }
 0x1bb   : > { %v669_v11 = vadd.f32 %v2424_v59, %v668_v9 }
 0x1bd   : > { %v723_v13 = vmax.f32 %v669_v11, 0.0  ;;  %v658_v11 = vpop.f32.mrf.mxu1 }
 0x1bf   : > { %834 = vmatmul.bf16.gmra.mxu2 %v739_v14  ;;  %v2438_v16 = vpack.c.bf16 %v723_v13, %v722_v12  ;;  %v659_v14 = vadd.f32 %v2424_v59, %v658_v11 }
 0x1c1   : > { %v719_v19 = vmax.f32 %v659_v14, 0.0 }
 0x1c2   : > { %v671_v18 = vpop.f32.mrf.mxu2 }
 0x1c3   : > { %v672_v22 = vadd.f32 %v2424_v59, %v671_v18 }
 0x1c5   : > { %v724_v27 = vmax.f32 %v672_v22, 0.0  ;;  %v661_v18 = vpop.f32.mrf.mxu1  ;;  %v718_v22 = vmax.f32 %v657_v17, 0.0 }
 0x1c6   : > { %v662_v33 = vadd.f32 %v2424_v59, %v661_v18 }
 0x1c7   : > { %v744_v26 = vpack.c.bf16 %v719_v19, %v718_v22 }
 0x1ca   : > { %v673_v23 = vpop.f32.mrf.mxu2 }
 0x1cb   : > { %v674_v25 = vadd.f32 %v2424_v59, %v673_v23 }
 0x1cd   : > { %v725_v28 = vmax.f32 %v674_v25, 0.0 }
 0x1cf   : > { %839 = vmatmul.bf16.gmra.mxu2 %v740_v29  ;;  %v2447_v31 = vpack.c.bf16 %v725_v28, %v724_v27  ;;  %v663_v28 = vpop.f32.mrf.mxu1 }
 0x1d0   : > { %v664_v30 = vadd.f32 %v2424_v59, %v663_v28 }
 0x1d2   : > { %v676_v32 = vpop.f32.mrf.mxu2  ;;  %v721_v34 = vmax.f32 %v664_v30, 0.0 }
 0x1d3   : > { %v677_v37 = vadd.f32 %v2424_v59, %v676_v32  ;;  %v1937_v32 = vld [vmem:[%s2760_s3 + $0x80] sm:$0xff] }
 0x1d4   : > { %1032 = vmatpush.bf16.msrb.mxu3 %v1937_v32 }
 0x1d5   : > { %v726_v41 = vmax.f32 %v677_v37, 0.0  ;;  %v720_v37 = vmax.f32 %v662_v33, 0.0 }
 0x1da   : > { %v678_v38 = vpop.f32.mrf.mxu2 }
 0x1db   : > { %v679_v40 = vadd.f32 %v2424_v59, %v678_v38 }
 0x1dd   : > { %v727_v42 = vmax.f32 %v679_v40, 0.0 }
 0x1df   : > { %844 = vmatmul.bf16.gmra.mxu2 %v741_v43  ;;  %v2456_v45 = vpack.c.bf16 %v727_v42, %v726_v41  ;;  %v745_v41 = vpack.c.bf16 %v721_v34, %v720_v37 }
 0x1e2   : > { %v681_v47 = vpop.f32.mrf.mxu2 }
 0x1e3   : > { %v682_v53 = vadd.f32 %v2424_v59, %v681_v47 }
 0x1e5   : > { %v728_v58 = vmax.f32 %v682_v53, 0.0 }
 0x1ea   : > { %v683_v55 = vpop.f32.mrf.mxu2 }
 0x1eb   : > { %v684_v57 = vadd.f32 %v2424_v59, %v683_v55  ;;  %v1951_v55 = vld [vmem:[%s2760_s3 + $0xf0] sm:$0xff] }
 0x1ec   : > { %1230 = vmatpush.bf16.msrb.mxu0 %v1951_v55 }
 0x1ed   : > { %v729_v60 = vmax.f32 %v684_v57, 0.0 }
 0x1ef   : > { %849 = vmatmul.bf16.gmra.mxu2 %v742_v61  ;;  %v2465_v62 = vpack.c.bf16 %v729_v60, %v728_v58 }
 0x1f2   : > { %v686_v63 = vpop.f32.mrf.mxu2 }
 0x1f3   : > { %v687_v4 = vadd.f32 %v2424_v59, %v686_v63  ;;  %v1950_v63 = vld [vmem:[%s2760_s3 + $0xe8] sm:$0xff] }
 0x1f4   : > { %1231 = vmatpush.bf16.msrb.mxu0 %v1950_v63 }
 0x1f5   : > { %v730_v8 = vmax.f32 %v687_v4, 0.0 }
 0x1fa   : > { %v688_v5 = vpop.f32.mrf.mxu2 }
 0x1fb   : > { %v689_v7 = vadd.f32 %v2424_v59, %v688_v5  ;;  %v1949_v5 = vld [vmem:[%s2760_s3 + $0xe0] sm:$0xff] }
 0x1fc   : > { %1232 = vmatpush.bf16.msrb.mxu0 %v1949_v5 }
 0x1fd   : > { %v731_v9 = vmax.f32 %v689_v7, 0.0 }
 0x1ff   : > { %854 = vmatmul.bf16.gmra.mxu2 %v743_v10  ;;  %v2474_v12 = vpack.c.bf16 %v731_v9, %v730_v8 }
 0x202   : > { %v691_v13 = vpop.f32.mrf.mxu2 }
 0x203   : > { %v692_v20 = vadd.f32 %v2424_v59, %v691_v13 }
 0x205   : > { %v732_v24 = vmax.f32 %v692_v20, 0.0  ;;  %v1948_v20 = vld [vmem:[%s2760_s3 + $0xd8] sm:$0xff] }
 0x206   : > { %1233 = vmatpush.bf16.msrb.mxu0 %v1948_v20 }
 0x20a   : > { %v693_v21 = vpop.f32.mrf.mxu2 }
 0x20b   : > { %v694_v23 = vadd.f32 %v2424_v59, %v693_v21 }
 0x20d   : > { %v733_v25 = vmax.f32 %v694_v23, 0.0 }
 0x20f   : > { %859 = vmatmul.bf16.gmra.mxu2 %v744_v26  ;;  %v2483_v27 = vpack.c.bf16 %v733_v25, %v732_v24 }
 0x212   : > { %v696_v29 = vpop.f32.mrf.mxu2 }
 0x213   : > { %v697_v35 = vadd.f32 %v2424_v59, %v696_v29 }
 0x215   : > { %v734_v39 = vmax.f32 %v697_v35, 0.0 }
 0x21a   : > { %v698_v36 = vpop.f32.mrf.mxu2 }
 0x21b   : > { %v699_v38 = vadd.f32 %v2424_v59, %v698_v36 }
 0x21d   : > { %v735_v40 = vmax.f32 %v699_v38, 0.0 }
 0x21f   : > { %864 = vmatmul.bf16.gmra.mxu2 %v745_v41  ;;  %v2492_v42 = vpack.c.bf16 %v735_v40, %v734_v39 }
 0x222   : > { %v701_v43 = vpop.f32.mrf.mxu2 }
 0x223   : > { %v702_v46 = vadd.f32 %v2424_v59, %v701_v43 }
 0x225   : > { %v736_v50 = vmax.f32 %v702_v46, 0.0 }
 0x22a   : > { %v703_v47 = vpop.f32.mrf.mxu2 }
 0x22b   : > { %v704_v49 = vadd.f32 %v2424_v59, %v703_v47 }
 0x22d   : > { %v737_v51 = vmax.f32 %v704_v49, 0.0 }
 0x22f   : > { %869 = vmatmul.bf16.gmra.mxu2 %v2438_v16  ;;  %v2500_v52 = vpack.c.bf16 %v737_v51, %v736_v50 }
 0x232   : > { %v830_v53 = vpop.f32.mrf.mxu2 }
 0x233   : > { %v831_v56 = vadd.f32 %v2505_v54, %v830_v53 }
 0x235   : > { %v910_v58 = vmax.f32 %v831_v56, 0.0 }
 0x23a   : > { %v832_v59 = vpop.f32.mrf.mxu2 }
 0x23b   : > { %v833_v57 = vadd.f32 %v2505_v54, %v832_v59 }
 0x23d   : > { %v911_v16 = vmax.f32 %v833_v57, 0.0 }
 0x23f   : > { %874 = vmatmul.bf16.gmra.mxu2 %v2447_v31  ;;  %v942_v60 = vpack.c.bf16 %v911_v16, %v910_v58 }
 0x241   : > { %1033 = vmatmul.bf16.vlgmr.msrb.gmra.mxu3 %v942_v60  ;;  %v1960_v60 = vld [vmem:[%s2762_s5 + $0x38] sm:$0xff] }
 0x242   : > { %v835_v61 = vpop.f32.mrf.mxu2  ;;  %1434 = vmatpush.bf16.msrb.mxu1 %v1960_v60 }
 0x243   : > { %v836_v0 = vadd.f32 %v2505_v54, %v835_v61 }
 0x245   : > { %v912_v48 = vmax.f32 %v836_v0, 0.0  ;;  %v2559_v0 = vld [vmem:[%s2761_s4 + $0x2] ss:$0 sm:$0xff] }
 0x24a   : > { %v837_v1 = vpop.f32.mrf.mxu2 }
 0x24b   : > { %v838_v2 = vadd.f32 %v2505_v54, %v837_v1 }
 0x24d   : > { %v913_v3 = vmax.f32 %v838_v2, 0.0 }
 0x24f   : > { %879 = vmatmul.bf16.gmra.mxu2 %v2456_v45  ;;  %v943_v4 = vpack.c.bf16 %v913_v3, %v912_v48 }
 0x251   : > { %1038 = vmatmul.bf16.gmra.mxu3 %v943_v4 }
 0x252   : > { %v840_v31 = vpop.f32.mrf.mxu2 }
 0x253   : > { %v841_v6 = vadd.f32 %v2505_v54, %v840_v31 }
 0x255   : > { %v914_v9 = vmax.f32 %v841_v6, 0.0 }
 0x25a   : > { %v842_v7 = vpop.f32.mrf.mxu2 }
 0x25b   : > { %v843_v8 = vadd.f32 %v2505_v54, %v842_v7 }
 0x25d   : > { %v915_v10 = vmax.f32 %v843_v8, 0.0 }
 0x25f   : > { %884 = vmatmul.bf16.gmra.mxu2 %v2465_v62  ;;  %v944_v11 = vpack.c.bf16 %v915_v10, %v914_v9  ;;  %v1959_v10 = vld [vmem:[%s2762_s5 + $0x30] sm:$0xff] }
 0x260   : > { %1435 = vmatpush.bf16.msrb.mxu1 %v1959_v10 }
 0x261   : > { %1043 = vmatmul.bf16.gmra.mxu3 %v944_v11 }
 0x262   : > { %v845_v45 = vpop.f32.mrf.mxu2 }
 0x263   : > { %v846_v13 = vadd.f32 %v2505_v54, %v845_v45 }
 0x265   : > { %v916_v17 = vmax.f32 %v846_v13, 0.0 }
 0x26a   : > { %v847_v14 = vpop.f32.mrf.mxu2 }
 0x26b   : > { %v848_v15 = vadd.f32 %v2505_v54, %v847_v14 }
 0x26d   : > { %v917_v18 = vmax.f32 %v848_v15, 0.0 }
 0x26f   : > { %889 = vmatmul.bf16.gmra.mxu2 %v2474_v12  ;;  %v945_v19 = vpack.c.bf16 %v917_v18, %v916_v17  ;;  %v1947_v12 = vld [vmem:[%s2760_s3 + $0xd0] sm:$0xff] }
 0x270   : > { %1234 = vmatpush.bf16.msrb.mxu0 %v1947_v12 }
 0x271   : > { %1048 = vmatmul.bf16.gmra.mxu3 %v945_v19 }
 0x272   : > { %v850_v62 = vpop.f32.mrf.mxu2 }
 0x273   : > { %v851_v21 = vadd.f32 %v2505_v54, %v850_v62 }
 0x275   : > { %v918_v24 = vmax.f32 %v851_v21, 0.0 }
 0x27a   : > { %v852_v22 = vpop.f32.mrf.mxu2 }
 0x27b   : > { %v853_v23 = vadd.f32 %v2505_v54, %v852_v22 }
 0x27d   : > { %v919_v25 = vmax.f32 %v853_v23, 0.0 }
 0x27f   : > { %894 = vmatmul.bf16.gmra.mxu2 %v2483_v27  ;;  %v946_v26 = vpack.c.bf16 %v919_v25, %v918_v24  ;;  %v1946_v27 = vld [vmem:[%s2760_s3 + $0xc8] sm:$0xff] }
 0x280   : > { %1235 = vmatpush.bf16.msrb.mxu0 %v1946_v27  ;;  %v1958_v25 = vld [vmem:[%s2762_s5 + $0x28] sm:$0xff] }
 0x281   : > { %1053 = vmatmul.bf16.gmra.mxu3 %v946_v26  ;;  %1436 = vmatpush.bf16.msrb.mxu1 %v1958_v25 }
 0x282   : > { %v855_v28 = vpop.f32.mrf.mxu2 }
 0x283   : > { %v856_v29 = vadd.f32 %v2505_v54, %v855_v28 }
 0x285   : > { %v920_v33 = vmax.f32 %v856_v29, 0.0 }
 0x28a   : > { %v857_v30 = vpop.f32.mrf.mxu2 }
 0x28b   : > { %v858_v32 = vadd.f32 %v2505_v54, %v857_v30 }
 0x28d   : > { %v921_v34 = vmax.f32 %v858_v32, 0.0 }
 0x28f   : > { %v947_v35 = vpack.c.bf16 %v921_v34, %v920_v33  ;;  %899 = vmatmul.bf16.gmra.mxu2 %v2492_v42  ;;  %v1945_v42 = vld [vmem:[%s2760_s3 + $0xc0] sm:$0xff] }
 0x290   : > { %1236 = vmatpush.bf16.msrb.mxu0 %v1945_v42 }
 0x291   : > { %1058 = vmatmul.bf16.gmra.mxu3 %v947_v35 }
 0x292   : > { %v860_v36 = vpop.f32.mrf.mxu2 }
 0x293   : > { %v861_v37 = vadd.f32 %v2505_v54, %v860_v36 }
 0x295   : > { %v922_v40 = vmax.f32 %v861_v37, 0.0 }
 0x29a   : > { %v862_v38 = vpop.f32.mrf.mxu2 }
 0x29b   : > { %v863_v39 = vadd.f32 %v2505_v54, %v862_v38 }
 0x29d   : > { %v923_v41 = vmax.f32 %v863_v39, 0.0 }
 0x29f   : > { %v948_v43 = vpack.c.bf16 %v923_v41, %v922_v40  ;;  %904 = vmatmul.bf16.gmra.mxu2 %v2500_v52  ;;  %v1957_v41 = vld [vmem:[%s2762_s5 + $0x20] sm:$0xff] }
 0x2a0   : > { %1437 = vmatpush.bf16.msrb.mxu1 %v1957_v41 }
 0x2a1   : > { %1063 = vmatmul.bf16.gmra.mxu3 %v948_v43 }
 0x2a2   : > { %v865_v44 = vpop.f32.mrf.mxu2 }
 0x2a3   : > { %v866_v46 = vadd.f32 %v2505_v54, %v865_v44 }
 0x2a5   : > { %v924_v50 = vmax.f32 %v866_v46, 0.0 }
 0x2aa   : > { %v867_v47 = vpop.f32.mrf.mxu2 }
 0x2ab   : > { %v868_v49 = vadd.f32 %v2505_v54, %v867_v47 }
 0x2ad   : > { %v925_v51 = vmax.f32 %v868_v49, 0.0 }
 0x2af   : > { %v949_v53 = vpack.c.bf16 %v925_v51, %v924_v50 }
 0x2b1   : > { %1068 = vmatmul.bf16.gmra.mxu3 %v949_v53 }
 0x2b2   : > { %v870_v55 = vpop.f32.mrf.mxu2 }
 0x2b3   : > { %v871_v56 = vadd.f32 %v2505_v54, %v870_v55 }
 0x2b5   : > { %v926_v57 = vmax.f32 %v871_v56, 0.0 }
 0x2ba   : > { %v872_v52 = vpop.f32.mrf.mxu2 }
 0x2bb   : > { %v873_v59 = vadd.f32 %v2505_v54, %v872_v52 }
 0x2bd   : > { %v927_v58 = vmax.f32 %v873_v59, 0.0 }
 0x2bf   : > { %v950_v16 = vpack.c.bf16 %v927_v58, %v926_v57  ;;  %v1956_v58 = vld [vmem:[%s2762_s5 + $0x18] sm:$0xff] }
 0x2c0   : > { %1438 = vmatpush.bf16.msrb.mxu1 %v1956_v58 }
 0x2c1   : > { %1073 = vmatmul.bf16.gmra.mxu3 %v950_v16 }
 0x2c2   : > { %v875_v61 = vpop.f32.mrf.mxu2 }
 0x2c3   : > { %v876_v1 = vadd.f32 %v2505_v54, %v875_v61 }
 0x2c4   : > { %v1034_v63 = vpop.f32.mrf.mxu3 }
 0x2c5   : > { %v1035_v48 = vadd.f32 %v2559_v0, %v1034_v63  ;;  %v928_v31 = vmax.f32 %v876_v1, 0.0 }
 0x2c7   : > { %v1114_v7 = vmax.f32 %v1035_v48, 0.0 }
 0x2ca   : > { %v877_v2 = vpop.f32.mrf.mxu2 }
 0x2cb   : > { %v878_v3 = vadd.f32 %v2505_v54, %v877_v2 }
 0x2cc   : > { %v1036_v4 = vpop.f32.mrf.mxu3 }
 0x2cd   : > { %v929_v5 = vmax.f32 %v878_v3, 0.0  ;;  %v1037_v6 = vadd.f32 %v2559_v0, %v1036_v4 }
 0x2cf   : > { %v951_v8 = vpack.c.bf16 %v929_v5, %v928_v31  ;;  %v1115_v9 = vmax.f32 %v1037_v6, 0.0 }
 0x2d1   : > { %1078 = vmatmul.bf16.gmra.mxu3 %v951_v8  ;;  %v1146_v11 = vpack.c.bf16 %v1115_v9, %v1114_v7  ;;  %v1955_v9 = vld [vmem:[%s2762_s5 + $0x10] sm:$0xff] }
 0x2d2   : > { %v880_v45 = vpop.f32.mrf.mxu2  ;;  %1439 = vmatpush.bf16.msrb.mxu1 %v1955_v9 }
 0x2d3   : > { %1237 = vmatmul.bf16.vlgmr.msrb.gmra.mxu0 %v1146_v11  ;;  %v881_v14 = vadd.f32 %v2505_v54, %v880_v45 }
 0x2d4   : > { %v1039_v13 = vpop.f32.mrf.mxu3 }
 0x2d5   : > { %v1040_v17 = vadd.f32 %v2559_v0, %v1039_v13  ;;  %v930_v20 = vmax.f32 %v881_v14, 0.0 }
 0x2d7   : > { %v1116_v22 = vmax.f32 %v1040_v17, 0.0 }
 0x2da   : > { %v882_v15 = vpop.f32.mrf.mxu2 }
 0x2db   : > { %v883_v18 = vadd.f32 %v2505_v54, %v882_v15 }
 0x2dc   : > { %v1041_v19 = vpop.f32.mrf.mxu3 }
 0x2dd   : > { %v931_v62 = vmax.f32 %v883_v18, 0.0  ;;  %v1042_v21 = vadd.f32 %v2559_v0, %v1041_v19 }
 0x2df   : > { %v952_v23 = vpack.c.bf16 %v931_v62, %v930_v20  ;;  %v1117_v24 = vmax.f32 %v1042_v21, 0.0 }
 0x2e1   : > { %1083 = vmatmul.bf16.gmra.mxu3 %v952_v23  ;;  %v1147_v26 = vpack.c.bf16 %v1117_v24, %v1116_v22  ;;  %v1954_v24 = vld [vmem:[%s2762_s5 + $0x8] sm:$0xff] }
 0x2e2   : > { %v885_v12 = vpop.f32.mrf.mxu2  ;;  %1440 = vmatpush.bf16.msrb.mxu1 %v1954_v24 }
 0x2e3   : > { %1242 = vmatmul.bf16.gmra.mxu0 %v1147_v26  ;;  %v886_v29 = vadd.f32 %v2505_v54, %v885_v12 }
 0x2e4   : > { %v1044_v28 = vpop.f32.mrf.mxu3 }
 0x2e5   : > { %v1045_v32 = vadd.f32 %v2559_v0, %v1044_v28  ;;  %v932_v35 = vmax.f32 %v886_v29, 0.0 }
 0x2e7   : > { %v1118_v37 = vmax.f32 %v1045_v32, 0.0 }
 0x2ea   : > { %v887_v30 = vpop.f32.mrf.mxu2 }
 0x2eb   : > { %v888_v33 = vadd.f32 %v2505_v54, %v887_v30 }
 0x2ec   : > { %v1046_v34 = vpop.f32.mrf.mxu3 }
 0x2ed   : > { %v933_v27 = vmax.f32 %v888_v33, 0.0  ;;  %v1047_v36 = vadd.f32 %v2559_v0, %v1046_v34 }
 0x2ef   : > { %v953_v38 = vpack.c.bf16 %v933_v27, %v932_v35  ;;  %v1119_v39 = vmax.f32 %v1047_v36, 0.0 }
 0x2f1   : > { %1088 = vmatmul.bf16.gmra.mxu3 %v953_v38  ;;  %v1148_v40 = vpack.c.bf16 %v1119_v39, %v1118_v37  ;;  %v1953_v39 = vld [vmem:[%s2762_s5] sm:$0xff] }
 0x2f2   : > { %v890_v43 = vpop.f32.mrf.mxu2  ;;  %1441 = vmatpush.bf16.msrb.mxu1 %v1953_v39 }
 0x2f3   : > { %1247 = vmatmul.bf16.gmra.mxu0 %v1148_v40  ;;  %v891_v44 = vadd.f32 %v2505_v54, %v890_v43 }
 0x2f4   : > { %v1049_v42 = vpop.f32.mrf.mxu3 }
 0x2f5   : > { %v1050_v47 = vadd.f32 %v2559_v0, %v1049_v42  ;;  %v934_v51 = vmax.f32 %v891_v44, 0.0 }
 0x2f7   : > { %v1120_v56 = vmax.f32 %v1050_v47, 0.0 }
 0x2fa   : > { %v892_v46 = vpop.f32.mrf.mxu2 }
 0x2fb   : > { %v893_v49 = vadd.f32 %v2505_v54, %v892_v46 }
 0x2fc   : > { %v1051_v50 = vpop.f32.mrf.mxu3 }
 0x2fd   : > { %v935_v53 = vmax.f32 %v893_v49, 0.0  ;;  %v1052_v55 = vadd.f32 %v2559_v0, %v1051_v50 }
 0x2ff   : > { %v954_v52 = vpack.c.bf16 %v935_v53, %v934_v51  ;;  %v1121_v59 = vmax.f32 %v1052_v55, 0.0 }
 0x301   : > { %1093 = vmatmul.bf16.gmra.mxu3 %v954_v52  ;;  %v1149_v57 = vpack.c.bf16 %v1121_v59, %v1120_v56  ;;  %v2617_v59 = vld [vmem:[%s2761_s4 + $0x3] ss:$0 sm:$0xff] }
 0x302   : > { %v895_v16 = vpop.f32.mrf.mxu2 }
 0x303   : > { %1252 = vmatmul.bf16.gmra.mxu0 %v1149_v57  ;;  %v896_v61 = vadd.f32 %v2505_v54, %v895_v16 }
 0x304   : > { %v1054_v60 = vpop.f32.mrf.mxu3 }
 0x305   : > { %v1055_v1 = vadd.f32 %v2559_v0, %v1054_v60  ;;  %v936_v3 = vmax.f32 %v896_v61, 0.0 }
 0x307   : > { %v1122_v5 = vmax.f32 %v1055_v1, 0.0 }
 0x30a   : > { %v897_v63 = vpop.f32.mrf.mxu2 }
 0x30b   : > { %v898_v2 = vadd.f32 %v2505_v54, %v897_v63 }
 0x30c   : > { %v1056_v48 = vpop.f32.mrf.mxu3 }
 0x30d   : > { %v937_v4 = vmax.f32 %v898_v2, 0.0  ;;  %v1057_v31 = vadd.f32 %v2559_v0, %v1056_v48 }
 0x30f   : > { %v955_v6 = vpack.c.bf16 %v937_v4, %v936_v3  ;;  %v1123_v7 = vmax.f32 %v1057_v31, 0.0 }
 0x311   : > { %v1150_v8 = vpack.c.bf16 %v1123_v7, %v1122_v5  ;;  %1098 = vmatmul.bf16.gmra.mxu3 %v955_v6 }
 0x312   : > { %v900_v10 = vpop.f32.mrf.mxu2 }
 0x313   : > { %1257 = vmatmul.bf16.gmra.mxu0 %v1150_v8  ;;  %v901_v45 = vadd.f32 %v2505_v54, %v900_v10 }
 0x314   : > { %v1059_v11 = vpop.f32.mrf.mxu3 }
 0x315   : > { %v1060_v14 = vadd.f32 %v2559_v0, %v1059_v11  ;;  %v938_v18 = vmax.f32 %v901_v45, 0.0 }
 0x317   : > { %v1124_v62 = vmax.f32 %v1060_v14, 0.0 }
 0x31a   : > { %v902_v13 = vpop.f32.mrf.mxu2 }
 0x31b   : > { %v903_v15 = vadd.f32 %v2505_v54, %v902_v13 }
 0x31c   : > { %v1061_v17 = vpop.f32.mrf.mxu3 }
 0x31d   : > { %v939_v19 = vmax.f32 %v903_v15, 0.0  ;;  %v1062_v20 = vadd.f32 %v2559_v0, %v1061_v17 }
 0x31f   : > { %v956_v21 = vpack.c.bf16 %v939_v19, %v938_v18  ;;  %v1125_v22 = vmax.f32 %v1062_v20, 0.0 }
 0x321   : > { %v1151_v23 = vpack.c.bf16 %v1125_v22, %v1124_v62  ;;  %1103 = vmatmul.bf16.gmra.mxu3 %v956_v21 }
 0x322   : > { %v905_v25 = vpop.f32.mrf.mxu2 }
 0x323   : > { %1262 = vmatmul.bf16.gmra.mxu0 %v1151_v23  ;;  %v906_v12 = vadd.f32 %v2505_v54, %v905_v25 }
 0x324   : > { %v1064_v26 = vpop.f32.mrf.mxu3 }
 0x325   : > { %v1065_v29 = vadd.f32 %v2559_v0, %v1064_v26  ;;  %v940_v33 = vmax.f32 %v906_v12, 0.0 }
 0x327   : > { %v1126_v27 = vmax.f32 %v1065_v29, 0.0 }
 0x32a   : > { %v907_v28 = vpop.f32.mrf.mxu2 }
 0x32b   : > { %v908_v30 = vadd.f32 %v2505_v54, %v907_v28 }
 0x32c   : > { %v1066_v32 = vpop.f32.mrf.mxu3 }
 0x32d   : > { %v941_v34 = vmax.f32 %v908_v30, 0.0  ;;  %v1067_v35 = vadd.f32 %v2559_v0, %v1066_v32 }
 0x32f   : > { %v957_v36 = vpack.c.bf16 %v941_v34, %v940_v33  ;;  %v1127_v37 = vmax.f32 %v1067_v35, 0.0 }
 0x331   : > { %v1152_v38 = vpack.c.bf16 %v1127_v37, %v1126_v27  ;;  %1108 = vmatmul.bf16.gmra.mxu3 %v957_v36 }
 0x333   : > { %1267 = vmatmul.bf16.gmra.mxu0 %v1152_v38 }
 0x334   : > { %v1069_v40 = vpop.f32.mrf.mxu3 }
 0x335   : > { %v1070_v41 = vadd.f32 %v2559_v0, %v1069_v40 }
 0x337   : > { %v1128_v42 = vmax.f32 %v1070_v41, 0.0 }
 0x33c   : > { %v1071_v54 = vpop.f32.mrf.mxu3 }
 0x33d   : > { %v1072_v43 = vadd.f32 %v2559_v0, %v1071_v54 }
 0x33f   : > { %v1129_v44 = vmax.f32 %v1072_v43, 0.0 }
 0x341   : > { %v1153_v46 = vpack.c.bf16 %v1129_v44, %v1128_v42 }
 0x343   : > { %1272 = vmatmul.bf16.gmra.mxu0 %v1153_v46 }
 0x344   : > { %v1074_v47 = vpop.f32.mrf.mxu3 }
 0x345   : > { %v1075_v49 = vadd.f32 %v2559_v0, %v1074_v47 }
 0x347   : > { %v1130_v53 = vmax.f32 %v1075_v49, 0.0 }
 0x34c   : > { %v1076_v50 = vpop.f32.mrf.mxu3 }
 0x34d   : > { %v1077_v51 = vadd.f32 %v2559_v0, %v1076_v50 }
 0x34f   : > { %v1131_v55 = vmax.f32 %v1077_v51, 0.0 }
 0x350   : > { %v1238_v56 = vpop.f32.mrf.mxu0 }
 0x351   : > { %v1154_v52 = vpack.c.bf16 %v1131_v55, %v1130_v53  ;;  %v1239_v58 = vadd.f32 %v2617_v59, %v1238_v56 }
 0x353   : > { %1277 = vmatmul.bf16.gmra.mxu0 %v1154_v52  ;;  %v1318_v61 = vmax.f32 %v1239_v58, 0.0 }
 0x354   : > { %v1079_v57 = vpop.f32.mrf.mxu3 }
 0x355   : > { %v1080_v63 = vadd.f32 %v2559_v0, %v1079_v57 }
 0x357   : > { %v1132_v4 = vmax.f32 %v1080_v63, 0.0 }
 0x358   : > { %v1240_v16 = vpop.f32.mrf.mxu0 }
 0x359   : > { %v1241_v60 = vadd.f32 %v2617_v59, %v1240_v16 }
 0x35b   : > { %v1319_v1 = vmax.f32 %v1241_v60, 0.0 }
 0x35c   : > { %v1081_v2 = vpop.f32.mrf.mxu3 }
 0x35d   : > { %v1082_v48 = vadd.f32 %v2559_v0, %v1081_v2  ;;  %v1350_v3 = vpack.c.bf16 %v1319_v1, %v1318_v61 }
 0x35f   : > { %v1133_v31 = vmax.f32 %v1082_v48, 0.0  ;;  %1442 = vmatmul.bf16.vlgmr.msrb.gmra.mxu1 %v1350_v3 }
 0x360   : > { %v1243_v5 = vpop.f32.mrf.mxu0 }
 0x361   : > { %v1155_v6 = vpack.c.bf16 %v1133_v31, %v1132_v4  ;;  %v1244_v8 = vadd.f32 %v2617_v59, %v1243_v5 }
 0x363   : > { %1282 = vmatmul.bf16.gmra.mxu0 %v1155_v6  ;;  %v1320_v11 = vmax.f32 %v1244_v8, 0.0 }
 0x364   : > { %v1084_v7 = vpop.f32.mrf.mxu3 }
 0x365   : > { %v1085_v45 = vadd.f32 %v2559_v0, %v1084_v7 }
 0x367   : > { %v1134_v18 = vmax.f32 %v1085_v45, 0.0 }
 0x368   : > { %v1245_v9 = vpop.f32.mrf.mxu0 }
 0x369   : > { %v1246_v10 = vadd.f32 %v2617_v59, %v1245_v9 }
 0x36b   : > { %v1321_v13 = vmax.f32 %v1246_v10, 0.0 }
 0x36c   : > { %v1086_v14 = vpop.f32.mrf.mxu3 }
 0x36d   : > { %v1087_v15 = vadd.f32 %v2559_v0, %v1086_v14  ;;  %v1351_v17 = vpack.c.bf16 %v1321_v13, %v1320_v11 }
 0x36f   : > { %v1135_v19 = vmax.f32 %v1087_v15, 0.0  ;;  %1447 = vmatmul.bf16.gmra.mxu1 %v1351_v17 }
 0x370   : > { %v1248_v20 = vpop.f32.mrf.mxu0 }
 0x371   : > { %v1156_v62 = vpack.c.bf16 %v1135_v19, %v1134_v18  ;;  %v1249_v22 = vadd.f32 %v2617_v59, %v1248_v20 }
 0x373   : > { %1287 = vmatmul.bf16.gmra.mxu0 %v1156_v62  ;;  %v1322_v25 = vmax.f32 %v1249_v22, 0.0 }
 0x374   : > { %v1089_v21 = vpop.f32.mrf.mxu3 }
 0x375   : > { %v1090_v26 = vadd.f32 %v2559_v0, %v1089_v21 }
 0x377   : > { %v1136_v32 = vmax.f32 %v1090_v26, 0.0 }
 0x378   : > { %v1250_v23 = vpop.f32.mrf.mxu0 }
 0x379   : > { %v1251_v24 = vadd.f32 %v2617_v59, %v1250_v23 }
 0x37b   : > { %v1323_v12 = vmax.f32 %v1251_v24, 0.0 }
 0x37c   : > { %v1091_v28 = vpop.f32.mrf.mxu3 }
 0x37d   : > { %v1092_v29 = vadd.f32 %v2559_v0, %v1091_v28  ;;  %v1352_v30 = vpack.c.bf16 %v1323_v12, %v1322_v25 }
 0x37f   : > { %v1137_v33 = vmax.f32 %v1092_v29, 0.0  ;;  %1452 = vmatmul.bf16.gmra.mxu1 %v1352_v30 }
 0x380   : > { %v1253_v34 = vpop.f32.mrf.mxu0 }
 0x381   : > { %v1157_v35 = vpack.c.bf16 %v1137_v33, %v1136_v32  ;;  %v1254_v36 = vadd.f32 %v2617_v59, %v1253_v34 }
 0x383   : > { %1292 = vmatmul.bf16.gmra.mxu0 %v1157_v35  ;;  %v1324_v39 = vmax.f32 %v1254_v36, 0.0 }
 0x384   : > { %v1094_v27 = vpop.f32.mrf.mxu3 }
 0x385   : > { %v1095_v40 = vadd.f32 %v2559_v0, %v1094_v27 }
 0x387   : > { %v1138_v44 = vmax.f32 %v1095_v40, 0.0 }
 0x388   : > { %v1255_v37 = vpop.f32.mrf.mxu0 }
 0x389   : > { %v1256_v38 = vadd.f32 %v2617_v59, %v1255_v37 }
 0x38b   : > { %v1325_v41 = vmax.f32 %v1256_v38, 0.0 }
 0x38c   : > { %v1096_v54 = vpop.f32.mrf.mxu3 }
 0x38d   : > { %v1097_v43 = vadd.f32 %v2559_v0, %v1096_v54  ;;  %v1353_v42 = vpack.c.bf16 %v1325_v41, %v1324_v39 }
 0x38f   : > { %v1139_v46 = vmax.f32 %v1097_v43, 0.0  ;;  %1457 = vmatmul.bf16.gmra.mxu1 %v1353_v42  ;;  %v2655_v43 = vld [vmem:[%s2763_s6] ss:$0 sm:$0xff] }
 0x390   : > { %v1258_v47 = vpop.f32.mrf.mxu0 }
 0x391   : > { %v1158_v49 = vpack.c.bf16 %v1139_v46, %v1138_v44  ;;  %v1259_v51 = vadd.f32 %v2617_v59, %v1258_v47 }
 0x393   : > { %1297 = vmatmul.bf16.gmra.mxu0 %v1158_v49  ;;  %v1326_v56 = vmax.f32 %v1259_v51, 0.0 }
 0x394   : > { %v1099_v50 = vpop.f32.mrf.mxu3 }
 0x395   : > { %v1100_v52 = vadd.f32 %v2559_v0, %v1099_v50 }
 0x397   : > { %v1140_v61 = vmax.f32 %v1100_v52, 0.0 }
 0x398   : > { %v1260_v53 = vpop.f32.mrf.mxu0 }
 0x399   : > { %v1261_v55 = vadd.f32 %v2617_v59, %v1260_v53 }
 0x39b   : > { %v1327_v57 = vmax.f32 %v1261_v55, 0.0 }
 0x39c   : > { %v1101_v58 = vpop.f32.mrf.mxu3 }
 0x39d   : > { %v1354_v16 = vpack.c.bf16 %v1327_v57, %v1326_v56  ;;  %v1102_v60 = vadd.f32 %v2559_v0, %v1101_v58 }
 0x39f   : > { %v1141_v63 = vmax.f32 %v1102_v60, 0.0  ;;  %1462 = vmatmul.bf16.gmra.mxu1 %v1354_v16 }
 0x3a0   : > { %v1263_v1 = vpop.f32.mrf.mxu0 }
 0x3a1   : > { %v1159_v2 = vpack.c.bf16 %v1141_v63, %v1140_v61  ;;  %v1264_v3 = vadd.f32 %v2617_v59, %v1263_v1 }
 0x3a3   : > { %1302 = vmatmul.bf16.gmra.mxu0 %v1159_v2  ;;  %v1328_v5 = vmax.f32 %v1264_v3, 0.0 }
 0x3a4   : > { %v1104_v48 = vpop.f32.mrf.mxu3 }
 0x3a5   : > { %v1105_v6 = vadd.f32 %v2559_v0, %v1104_v48 }
 0x3a7   : > { %v1142_v11 = vmax.f32 %v1105_v6, 0.0 }
 0x3a8   : > { %v1265_v4 = vpop.f32.mrf.mxu0 }
 0x3a9   : > { %v1266_v31 = vadd.f32 %v2617_v59, %v1265_v4 }
 0x3ab   : > { %v1329_v7 = vmax.f32 %v1266_v31, 0.0 }
 0x3ac   : > { %v1106_v8 = vpop.f32.mrf.mxu3 }
 0x3ad   : > { %v1355_v9 = vpack.c.bf16 %v1329_v7, %v1328_v5  ;;  %v1107_v10 = vadd.f32 %v2559_v0, %v1106_v8 }
 0x3af   : > { %v1143_v45 = vmax.f32 %v1107_v10, 0.0  ;;  %1467 = vmatmul.bf16.gmra.mxu1 %v1355_v9 }
 0x3b0   : > { %v1268_v13 = vpop.f32.mrf.mxu0 }
 0x3b1   : > { %v1160_v14 = vpack.c.bf16 %v1143_v45, %v1142_v11  ;;  %v1269_v17 = vadd.f32 %v2617_v59, %v1268_v13 }
 0x3b3   : > { %1307 = vmatmul.bf16.gmra.mxu0 %v1160_v14  ;;  %v1330_v20 = vmax.f32 %v1269_v17, 0.0 }
 0x3b4   : > { %v1109_v15 = vpop.f32.mrf.mxu3 }
 0x3b5   : > { %v1110_v62 = vadd.f32 %v2559_v0, %v1109_v15 }
 0x3b7   : > { %v1144_v25 = vmax.f32 %v1110_v62, 0.0 }
 0x3b8   : > { %v1270_v18 = vpop.f32.mrf.mxu0 }
 0x3b9   : > { %v1271_v19 = vadd.f32 %v2617_v59, %v1270_v18 }
 0x3bb   : > { %v1331_v21 = vmax.f32 %v1271_v19, 0.0 }
 0x3bc   : > { %v1111_v22 = vpop.f32.mrf.mxu3 }
 0x3bd   : > { %v1356_v23 = vpack.c.bf16 %v1331_v21, %v1330_v20  ;;  %v1112_v24 = vadd.f32 %v2559_v0, %v1111_v22 }
 0x3bf   : > { %v1145_v26 = vmax.f32 %v1112_v24, 0.0  ;;  %1472 = vmatmul.bf16.gmra.mxu1 %v1356_v23 }
 0x3c0   : > { %v1273_v12 = vpop.f32.mrf.mxu0 }
 0x3c1   : > { %v1161_v28 = vpack.c.bf16 %v1145_v26, %v1144_v25  ;;  %v1274_v29 = vadd.f32 %v2617_v59, %v1273_v12 }
 0x3c3   : > { %1312 = vmatmul.bf16.gmra.mxu0 %v1161_v28  ;;  %v1332_v33 = vmax.f32 %v1274_v29, 0.0 }
 0x3c8   : > { %v1275_v30 = vpop.f32.mrf.mxu0 }
 0x3c9   : > { %v1276_v32 = vadd.f32 %v2617_v59, %v1275_v30 }
 0x3cb   : > { %v1333_v34 = vmax.f32 %v1276_v32, 0.0 }
 0x3cd   : > { %v1357_v35 = vpack.c.bf16 %v1333_v34, %v1332_v33 }
 0x3cf   : > { %1477 = vmatmul.bf16.gmra.mxu1 %v1357_v35 }
 0x3d0   : > { %v1278_v27 = vpop.f32.mrf.mxu0 }
 0x3d1   : > { %v1279_v0 = vadd.f32 %v2617_v59, %v1278_v27 }
 0x3d3   : > { %v1334_v38 = vmax.f32 %v1279_v0, 0.0 }
 0x3d8   : > { %v1280_v36 = vpop.f32.mrf.mxu0 }
 0x3d9   : > { %v1281_v37 = vadd.f32 %v2617_v59, %v1280_v36 }
 0x3db   : > { %v1335_v39 = vmax.f32 %v1281_v37, 0.0 }
 0x3dc   : > { %v1443_v40 = vpop.f32.mrf.mxu1 }
 0x3dd   : > { %v1358_v41 = vpack.c.bf16 %v1335_v39, %v1334_v38  ;;  %v1444_v44 = vadd.f32 %v2655_v43, %v1443_v40 }
 0x3df   : > { %1482 = vmatmul.bf16.gmra.mxu1 %v1358_v41 }
 0x3e0   : > { %v1283_v54 = vpop.f32.mrf.mxu0 }
 0x3e1   : > { %v1284_v47 = vadd.f32 %v2617_v59, %v1283_v54 }
 0x3e3   : > { %v1336_v53 = vmax.f32 %v1284_v47, 0.0 }
 0x3e4   : > { %v1445_v42 = vpop.f32.mrf.mxu1 }
 0x3e5   : > { %v1446_v46 = vadd.f32 %v2655_v43, %v1445_v42 }
 0x3e7   : > { %v1965_v49 = vpack.c.bf16 %v1446_v46, %v1444_v44 }
 0x3e8   : > { %v1285_v50 = vpop.f32.mrf.mxu0 }
 0x3e9   : > { %1966 = vst [vmem:[%s2662_s22] sm:$0xff] %v1965_v49   ;;  %v1286_v51 = vadd.f32 %v2617_v59, %v1285_v50 }
 0x3eb   : > { %v1337_v55 = vmax.f32 %v1286_v51, 0.0 }
 0x3ec   : > { %v1448_v56 = vpop.f32.mrf.mxu1 }
 0x3ed   : > { %v1359_v52 = vpack.c.bf16 %v1337_v55, %v1336_v53  ;;  %v1449_v16 = vadd.f32 %v2655_v43, %v1448_v56 }
 0x3ef   : > { %1487 = vmatmul.bf16.gmra.mxu1 %v1359_v52 }
 0x3f0   : > { %v1288_v57 = vpop.f32.mrf.mxu0 }
 0x3f1   : > { %v1289_v61 = vadd.f32 %v2617_v59, %v1288_v57 }
 0x3f3   : > { %v1338_v48 = vmax.f32 %v1289_v61, 0.0 }
 0x3f4   : > { %v1450_v58 = vpop.f32.mrf.mxu1 }
 0x3f5   : > { %v1451_v60 = vadd.f32 %v2655_v43, %v1450_v58 }
 0x3f7   : > { %v1970_v63 = vpack.c.bf16 %v1451_v60, %v1449_v16 }
 0x3f8   : > { %v1290_v1 = vpop.f32.mrf.mxu0 }
 0x3f9   : > { %2042 = vst [vmem:[%s2662_s22 + $0x8] sm:$0xff] %v1970_v63   ;;  %v1291_v2 = vadd.f32 %v2617_v59, %v1290_v1 }
 0x3fb   : > { %v1339_v3 = vmax.f32 %v1291_v2, 0.0 }
 0x3fc   : > { %v1453_v4 = vpop.f32.mrf.mxu1 }
 0x3fd   : > { %v1360_v31 = vpack.c.bf16 %v1339_v3, %v1338_v48  ;;  %v1454_v7 = vadd.f32 %v2655_v43, %v1453_v4 }
 0x3ff   : > { %1492 = vmatmul.bf16.gmra.mxu1 %v1360_v31 }
 0x400   : > { %v1293_v5 = vpop.f32.mrf.mxu0 }
 0x401   : > { %v1294_v9 = vadd.f32 %v2617_v59, %v1293_v5 }
 0x403   : > { %v1340_v13 = vmax.f32 %v1294_v9, 0.0 }
 0x404   : > { %v1455_v6 = vpop.f32.mrf.mxu1 }
 0x405   : > { %v1456_v8 = vadd.f32 %v2655_v43, %v1455_v6 }
 0x407   : > { %v1975_v10 = vpack.c.bf16 %v1456_v8, %v1454_v7 }
 0x408   : > { %v1295_v11 = vpop.f32.mrf.mxu0 }
 0x409   : > { %2043 = vst [vmem:[%s2662_s22 + $0x10] sm:$0xff] %v1975_v10   ;;  %v1296_v45 = vadd.f32 %v2617_v59, %v1295_v11 }
 0x40b   : > { %v1341_v14 = vmax.f32 %v1296_v45, 0.0 }
 0x40c   : > { %v1458_v15 = vpop.f32.mrf.mxu1 }
 0x40d   : > { %v1361_v17 = vpack.c.bf16 %v1341_v14, %v1340_v13  ;;  %v1459_v20 = vadd.f32 %v2655_v43, %v1458_v15 }
 0x40f   : > { %1497 = vmatmul.bf16.gmra.mxu1 %v1361_v17 }
 0x410   : > { %v1298_v18 = vpop.f32.mrf.mxu0 }
 0x411   : > { %v1299_v21 = vadd.f32 %v2617_v59, %v1298_v18 }
 0x413   : > { %v1342_v25 = vmax.f32 %v1299_v21, 0.0 }
 0x414   : > { %v1460_v19 = vpop.f32.mrf.mxu1 }
 0x415   : > { %v1461_v62 = vadd.f32 %v2655_v43, %v1460_v19 }
 0x417   : > { %v1980_v22 = vpack.c.bf16 %v1461_v62, %v1459_v20 }
 0x418   : > { %v1300_v23 = vpop.f32.mrf.mxu0 }
 0x419   : > { %2044 = vst [vmem:[%s2662_s22 + $0x18] sm:$0xff] %v1980_v22   ;;  %v1301_v24 = vadd.f32 %v2617_v59, %v1300_v23 }
 0x41b   : > { %v1343_v26 = vmax.f32 %v1301_v24, 0.0 }
 0x41c   : > { %v1463_v12 = vpop.f32.mrf.mxu1 }
 0x41d   : > { %v1362_v28 = vpack.c.bf16 %v1343_v26, %v1342_v25  ;;  %v1464_v32 = vadd.f32 %v2655_v43, %v1463_v12 }
 0x41f   : > { %1502 = vmatmul.bf16.gmra.mxu1 %v1362_v28 }
 0x420   : > { %v1303_v29 = vpop.f32.mrf.mxu0 }
 0x421   : > { %v1304_v34 = vadd.f32 %v2617_v59, %v1303_v29 }
 0x423   : > { %v1344_v36 = vmax.f32 %v1304_v34, 0.0 }
 0x424   : > { %v1465_v30 = vpop.f32.mrf.mxu1 }
 0x425   : > { %v1466_v33 = vadd.f32 %v2655_v43, %v1465_v30 }
 0x427   : > { %v1985_v35 = vpack.c.bf16 %v1466_v33, %v1464_v32 }
 0x428   : > { %v1305_v27 = vpop.f32.mrf.mxu0 }
 0x429   : > { %2045 = vst [vmem:[%s2662_s22 + $0x20] sm:$0xff] %v1985_v35   ;;  %v1306_v0 = vadd.f32 %v2617_v59, %v1305_v27 }
 0x42b   : > { %v1345_v37 = vmax.f32 %v1306_v0, 0.0 }
 0x42c   : > { %v1468_v38 = vpop.f32.mrf.mxu1 }
 0x42d   : > { %v1363_v39 = vpack.c.bf16 %v1345_v37, %v1344_v36  ;;  %v1469_v54 = vadd.f32 %v2655_v43, %v1468_v38 }
 0x42f   : > { %1507 = vmatmul.bf16.gmra.mxu1 %v1363_v39 }
 0x430   : > { %v1308_v40 = vpop.f32.mrf.mxu0 }
 0x431   : > { %v1309_v44 = vadd.f32 %v2617_v59, %v1308_v40 }
 0x433   : > { %v1346_v50 = vmax.f32 %v1309_v44, 0.0 }
 0x434   : > { %v1470_v41 = vpop.f32.mrf.mxu1 }
 0x435   : > { %v1471_v42 = vadd.f32 %v2655_v43, %v1470_v41 }
 0x437   : > { %v1990_v46 = vpack.c.bf16 %v1471_v42, %v1469_v54 }
 0x438   : > { %v1310_v47 = vpop.f32.mrf.mxu0 }
 0x439   : > { %2046 = vst [vmem:[%s2662_s22 + $0x28] sm:$0xff] %v1990_v46   ;;  %v1311_v49 = vadd.f32 %v2617_v59, %v1310_v47 }
 0x43b   : > { %v1347_v51 = vmax.f32 %v1311_v49, 0.0 }
 0x43c   : > { %v1473_v53 = vpop.f32.mrf.mxu1 }
 0x43d   : > { %v1364_v55 = vpack.c.bf16 %v1347_v51, %v1346_v50  ;;  %v1474_v57 = vadd.f32 %v2655_v43, %v1473_v53 }
 0x43f   : > { %1512 = vmatmul.bf16.gmra.mxu1 %v1364_v55 }
 0x440   : > { %v1313_v56 = vpop.f32.mrf.mxu0 }
 0x441   : > { %v1314_v16 = vadd.f32 %v2617_v59, %v1313_v56 }
 0x443   : > { %v1348_v1 = vmax.f32 %v1314_v16, 0.0 }
 0x444   : > { %v1475_v52 = vpop.f32.mrf.mxu1 }
 0x445   : > { %v1476_v58 = vadd.f32 %v2655_v43, %v1475_v52 }
 0x447   : > { %v1995_v60 = vpack.c.bf16 %v1476_v58, %v1474_v57 }
 0x448   : > { %v1315_v61 = vpop.f32.mrf.mxu0 }
 0x449   : > { %2047 = vst [vmem:[%s2662_s22 + $0x30] sm:$0xff] %v1995_v60   ;;  %v1316_v63 = vadd.f32 %v2617_v59, %v1315_v61 }
 0x44b   : > { %v1349_v2 = vmax.f32 %v1316_v63, 0.0 }
 0x44c   : > { %v1478_v48 = vpop.f32.mrf.mxu1 }
 0x44d   : > { %v1365_v3 = vpack.c.bf16 %v1349_v2, %v1348_v1  ;;  %v1479_v31 = vadd.f32 %v2655_v43, %v1478_v48 }
 0x44f   : > { %1517 = vmatmul.bf16.gmra.mxu1 %v1365_v3 }
 0x454   : > { %v1480_v4 = vpop.f32.mrf.mxu1 }
 0x455   : > { %v1481_v5 = vadd.f32 %v2655_v43, %v1480_v4 }
 0x457   : > { %v2000_v6 = vpack.c.bf16 %v1481_v5, %v1479_v31 }
 0x459   : > { %2048 = vst [vmem:[%s2662_s22 + $0x38] sm:$0xff] %v2000_v6  }
 0x45c   : > { %v1483_v7 = vpop.f32.mrf.mxu1 }
 0x45d   : > { %v1484_v9 = vadd.f32 %v2655_v43, %v1483_v7 }
 0x464   : > { %v1485_v8 = vpop.f32.mrf.mxu1 }
 0x465   : > { %v1486_v59 = vadd.f32 %v2655_v43, %v1485_v8 }
 0x467   : > { %v2005_v10 = vpack.c.bf16 %v1486_v59, %v1484_v9 }
 0x469   : > { %2049 = vst [vmem:[%s2662_s22 + $0x40] sm:$0xff] %v2005_v10  }
 0x46c   : > { %v1488_v11 = vpop.f32.mrf.mxu1 }
 0x46d   : > { %v1489_v13 = vadd.f32 %v2655_v43, %v1488_v11 }
 0x474   : > { %v1490_v45 = vpop.f32.mrf.mxu1 }
 0x475   : > { %v1491_v14 = vadd.f32 %v2655_v43, %v1490_v45 }
 0x477   : > { %v2010_v15 = vpack.c.bf16 %v1491_v14, %v1489_v13 }
 0x479   : > { %2050 = vst [vmem:[%s2662_s22 + $0x48] sm:$0xff] %v2010_v15  }
 0x47c   : > { %v1493_v17 = vpop.f32.mrf.mxu1 }
 0x47d   : > { %v1494_v19 = vadd.f32 %v2655_v43, %v1493_v17 }
 0x484   : > { %v1495_v18 = vpop.f32.mrf.mxu1 }
 0x485   : > { %v1496_v20 = vadd.f32 %v2655_v43, %v1495_v18 }
 0x487   : > { %v2015_v62 = vpack.c.bf16 %v1496_v20, %v1494_v19 }
 0x489   : > { %2051 = vst [vmem:[%s2662_s22 + $0x50] sm:$0xff] %v2015_v62  }
 0x48c   : > { %v1498_v21 = vpop.f32.mrf.mxu1 }
 0x48d   : > { %v1499_v23 = vadd.f32 %v2655_v43, %v1498_v21 }
 0x494   : > { %v1500_v22 = vpop.f32.mrf.mxu1 }
 0x495   : > { %v1501_v24 = vadd.f32 %v2655_v43, %v1500_v22 }
 0x497   : > { %v2020_v25 = vpack.c.bf16 %v1501_v24, %v1499_v23 }
 0x499   : > { %2052 = vst [vmem:[%s2662_s22 + $0x58] sm:$0xff] %v2020_v25  }
 0x49c   : > { %v1503_v26 = vpop.f32.mrf.mxu1 }
 0x49d   : > { %v1504_v28 = vadd.f32 %v2655_v43, %v1503_v26 }
 0x4a4   : > { %v1505_v12 = vpop.f32.mrf.mxu1 }
 0x4a5   : > { %v1506_v29 = vadd.f32 %v2655_v43, %v1505_v12 }
 0x4a7   : > { %v2025_v30 = vpack.c.bf16 %v1506_v29, %v1504_v28 }
 0x4a9   : > { %2053 = vst [vmem:[%s2662_s22 + $0x60] sm:$0xff] %v2025_v30  }
 0x4ac   : > { %v1508_v32 = vpop.f32.mrf.mxu1 }
 0x4ad   : > { %v1509_v34 = vadd.f32 %v2655_v43, %v1508_v32 }
 0x4b4   : > { %v1510_v33 = vpop.f32.mrf.mxu1 }
 0x4b5   : > { %v1511_v35 = vadd.f32 %v2655_v43, %v1510_v33 }
 0x4b7   : > { %v2030_v27 = vpack.c.bf16 %v1511_v35, %v1509_v34 }
 0x4b9   : > { %2054 = vst [vmem:[%s2662_s22 + $0x68] sm:$0xff] %v2030_v27  }
 0x4bc   : > { %v1513_v0 = vpop.f32.mrf.mxu1 }
 0x4bd   : > { %v1514_v37 = vadd.f32 %v2655_v43, %v1513_v0 }
 0x4c4   : > { %v1515_v36 = vpop.f32.mrf.mxu1 }
 0x4c5   : > { %v1516_v38 = vadd.f32 %v2655_v43, %v1515_v36 }
 0x4c7   : > { %v2035_v39 = vpack.c.bf16 %v1516_v38, %v1514_v37 }
 0x4c9   : > { %2055 = vst [vmem:[%s2662_s22 + $0x70] sm:$0xff] %v2035_v39  }
 0x4cc   : > { %v1518_v40 = vpop.f32.mrf.mxu1 }
 0x4cd   : > { %v1519_v54 = vadd.f32 %v2655_v43, %v1518_v40 }
 0x4d4   : > { %v1520_v41 = vpop.f32.mrf.mxu1 }
 0x4d5   : > { %v1521_v42 = vadd.f32 %v2655_v43, %v1520_v41 }
 0x4d7   : > { %v2040_v44 = vpack.c.bf16 %v1521_v42, %v1519_v54 }
 0x4d9   : > { %2056 = vst [vmem:[%s2662_s22 + $0x78] sm:$0xff] %v2040_v44  }
 0x4da   : > { %2143 = shalt.err (!%p2140_p3)
}
 0x4db   : > { %s2180_s18 = smov 64   ;;  %s2181_s22 = smov 4  }
 0x4dc   : > { %2069 = dma.vmem_to_hbm [thread:$0]  (%p2260_p5), %s1601_s14, 2048, %s1603_s15, %s1588_s16, %s2180_s18, %s2180_s18, %s2181_s22  }
 0x4dd PF: > { %p2075_p4 = scmp.ge.s32.totalorder %s2178_s27, 2  ;;  %s1617_s8 = sand.u32 1, %s2166_s24  }
 0x4de   : > { %s1618_s9 = scalar_lea.sflag [#allocation3], %s1617_s8 }
 0x4df   : > { %p2072_p7 = pnand %p2075_p4, %p2264_p6 }
 0x4e1   : > { %p2073_p8 = pneg %p2072_p7 }
 0x4e3   : > { %2161 = dma.done.wait (%p2073_p8), %s1618_s9, 2048  }
 0x4e4   : > { %2163 = vsyncadd (%p2073_p8), %s1618_s9, 4294965248  ;;  %p17_p9 = scmp.ge.s32.totalorder %s2247_s30, 4   ;;  %s2767_s24 = smov %s2170_s25 }
 0x4e5   : > { %s2768_s25 = smov %s2174_s26  ;;  %s2769_s26 = smov %s2258_s10 }
 0x4e6   : > { %s2770_s27 = smov %s2247_s30  ;;  %19 = sbr.rel (!%p17_p9) target bundleno = 3 (0x3), region = 86 }
 0x4eb   :  { %1624 = vsyncpa [#allocation3], 1 }
 0x4ec   :  { %1626 = vsyncpa [#allocation3 + $0x1], 1 }

</bundles_post_ra>
